<compile_context>
chip_gen: v6e
topology: v6e:2x2x1
jax: 0.10.0
libtpu: 0.0.40
codegen_flags: <defaults>
</compile_context>

<pallas_src>
import functools

import jax
import jax.numpy as jnp
from jax.experimental import pallas as pl
from jax.experimental.pallas import tpu as pltpu

BN_EPS = 1e-5


def _round_up(x, m):
    return ((x + m - 1) // m) * m


# ---------------------------------------------------------------------------
# Pass 1: conv matmul + per-channel batch statistics, single read of xcol.
# Grid: (sample n ["parallel"], position tile j ["arbitrary"]).
#   xcol_ref : (1, Kdp, TM) bf16   streamed, transposed im2col tile
#   w_ref    : (Cp, Kdp)    bf16   resident raw conv weight (zero padded)
#   y_ref    : (1, Cout, TM) f32   un-normalized conv output (lane-dense)
#   sy_ref   : (1, Cp, 1)   f32    per-sample sum_m y[c, m]     (resident acc)
#   sy2_ref  : (1, Cp, 1)   f32    per-sample sum_m y[c, m]^2   (resident acc)
# ---------------------------------------------------------------------------
def _conv_stats_kernel(cout, xcol_ref, w_ref, y_ref, sy_ref, sy2_ref):
    @pl.when(pl.program_id(1) == 0)
    def _init():
        sy_ref[...] = jnp.zeros_like(sy_ref)
        sy2_ref[...] = jnp.zeros_like(sy2_ref)

    # (Cp, Kdp) @ (Kdp, TM) -> (Cp, TM), f32 accumulation on the MXU.
    acc = jnp.dot(w_ref[...], xcol_ref[0], preferred_element_type=jnp.float32)
    sy_ref[...] += jnp.sum(acc, axis=1, keepdims=True)[None]
    sy2_ref[...] += jnp.sum(acc * acc, axis=1, keepdims=True)[None]
    # Lane-dense store of the real channels; positions are the minor dim so the
    # final NCDHW layout is a pure reshape downstream.
    y_ref[0] = acc[:cout, :]


# ---------------------------------------------------------------------------
# Pass 2: per-channel affine (folded BatchNorm): out = y * scale + bias.
#   y_ref/o_ref : (1, Cout, TM) f32, scale/bias : (Cout, 1) f32 (resident)
# The output aliases the pass-1 buffer (in-place normalization).
# ---------------------------------------------------------------------------
def _scale_bias_kernel(y_ref, scale_ref, bias_ref, o_ref):
    o_ref[0] = y_ref[0] * scale_ref[...] + bias_ref[...]


# ---------------------------------------------------------------------------
# XLA-side helpers
# ---------------------------------------------------------------------------
def _im2col_3d_t(x, k, pad, ms_pad, kdp):
    """x: (N, Cin, D, H, W) -> (N, kdp, ms_pad) bf16 transposed im2col.

    Row order (c, kz, ky, kx) matches weight.reshape(Cout, Cin*K^3); column
    order is the flattened output position (d, h, w).  Zero-padded rows/cols
    are numerically inert in the contraction / statistics.
    """
    n, c, d, h, w = x.shape
    xp = jnp.pad(
        x, ((0, 0), (0, 0), (pad, pad), (pad, pad), (pad, pad))
    ).astype(jnp.bfloat16)
    patches = []
    for kz in range(k):
        for ky in range(k):
            for kx in range(k):
                patches.append(xp[:, :, kz:kz + d, ky:ky + h, kx:kx + w])
    cols = jnp.stack(patches, axis=2)                 # (N, C, K^3, D, H, W)
    kd, ms = c * k * k * k, d * h * w
    cols = cols.reshape(n, kd, ms)
    return jnp.pad(cols, ((0, 0), (0, kdp - kd), (0, ms_pad - ms)))


def _vmem_estimate(tm, kdp, cp, cout):
    """Rough VMEM bytes for pass 1 at tile size tm (double-buffered streams)."""
    xcol_buf = 2 * kdp * tm * 2          # streamed bf16 input tile, 2 buffers
    y_buf = 2 * cout * tm * 4            # streamed f32 output tile, 2 buffers
    w_buf = 2 * cp * kdp * 2             # resident bf16 weight (conservative x2)
    acc_tmp = tm * cp * 4                # f32 MXU accumulator tile
    sums = 4 * cp * 4 * 2                # resident stat accumulators
    return xcol_buf + y_buf + w_buf + acc_tmp + sums + (1 << 20)


def _pick_tile(ms, kdp, cp, cout, budget=24 * 1024 * 1024):
    """Largest 128-aligned position tile that fits the VMEM budget and wastes
    the least padding (budget * 2x headroom stays <= 48 MiB -> v7x safe)."""
    ms128 = _round_up(ms, 128)
    cands = [c for c in (2048, 1024, 512, 256, 128) if c <= ms128]
    if not cands:                        # tiny volume: single (masked) tile
        return _round_up(ms, 8)
    best = None
    for c in cands:
        if _vmem_estimate(c, kdp, cp, cout) > budget:
            continue
        key = (_round_up(ms, c), -c)     # least padding, then largest tile
        if best is None or key < best[0]:
            best = (key, c)
    return best[1] if best is not None else cands[-1]


@functools.partial(jax.jit, static_argnames=("kernel_size",))
def conv_bn3d_forward(x, weight, gamma, beta, *, kernel_size=3):
    """ConvBn3d forward.  x: (N, Cin, D, H, W) -> (N, Cout, D, H, W) float32.

    Conv3d: stride=1, padding=(kernel_size-1)//2, bias=False.
    BatchNorm3d: training mode (biased batch variance, eps=1e-5, affine).
    """
    n, cin, d, h, w = x.shape
    cout = weight.shape[0]
    k = kernel_size
    pad = (k - 1) // 2

    ms = d * h * w                        # output positions per sample, (d,h,w)
    kd = cin * k * k * k
    kdp = _round_up(kd, 128)              # lane/sublane-aligned contraction
    cp = _round_up(cout, 128)             # MXU M-dim (zero-padded channels)

    tm = _pick_tile(ms, kdp, cp, cout)
    ms_pad = _round_up(ms, tm)
    n_tiles = ms_pad // tm
    vmem_limit = int(
        max(32 * 1024 * 1024,
            min(48 * 1024 * 1024, 2 * _vmem_estimate(tm, kdp, cp, cout)))
    )

    xcol = _im2col_3d_t(x, k, pad, ms_pad, kdp)       # (N, kdp, ms_pad) bf16

    # Raw conv weight, (cp, kdp), zero padded; BN is NOT folded here (stats are
    # produced by the same pass), it is applied by the cheap pass 2 instead.
    wmat = (
        jnp.zeros((cp, kdp), jnp.float32)
        .at[:cout, :kd]
        .set(weight.reshape(cout, kd).astype(jnp.float32))
        .astype(jnp.bfloat16)
    )

    grid = (n, n_tiles)

    # ---- pass 1: conv matmul + per-sample per-channel y statistics ----------
    y_raw, sy_part, sy2_part = pl.pallas_call(
        functools.partial(_conv_stats_kernel, cout),
        grid=grid,
        in_specs=[
            pl.BlockSpec((1, kdp, tm), lambda i, j: (i, 0, j)),   # streamed xcol
            pl.BlockSpec((cp, kdp), lambda i, j: (0, 0)),         # resident weight
        ],
        out_specs=(
            pl.BlockSpec((1, cout, tm), lambda i, j: (i, 0, j)),  # conv output
            pl.BlockSpec((1, cp, 1), lambda i, j: (i, 0, 0)),     # sum(y)   (acc)
            pl.BlockSpec((1, cp, 1), lambda i, j: (i, 0, 0)),     # sum(y^2) (acc)
        ),
        out_shape=(
            jax.ShapeDtypeStruct((n, cout, ms_pad), jnp.float32),
            jax.ShapeDtypeStruct((n, cp, 1), jnp.float32),
            jax.ShapeDtypeStruct((n, cp, 1), jnp.float32),
        ),
        compiler_params=pltpu.CompilerParams(
            dimension_semantics=("parallel", "arbitrary"),
            vmem_limit_bytes=vmem_limit,
        ),
        cost_estimate=pl.CostEstimate(
            flops=2 * n * ms_pad * kdp * cp,
            transcendentals=0,
            bytes_accessed=(n * ms_pad * kdp * 2 + cp * kdp * 2
                            + n * ms_pad * cout * 4 + 2 * n * cp * 4),
        ),
    )(xcol, wmat)

    # ---- BN batch statistics + affine fold (tiny, f32, on the host graph) ---
    count = n * ms                                   # true elements per channel
    sum_y = jnp.sum(sy_part, axis=0)[:cout, 0]
    sum_y2 = jnp.sum(sy2_part, axis=0)[:cout, 0]
    mean = sum_y / count
    # NOTE: E[y^2] - mean^2 loses precision when |mean| >> std; clamped at 0.
    var = jnp.maximum(sum_y2 / count - mean * mean, 0.0)
    scale = gamma * jax.lax.rsqrt(var + BN_EPS)
    bias = beta - mean * scale

    # ---- pass 2: elementwise y*scale + bias, in place over the pass-1 buffer
    out = pl.pallas_call(
        _scale_bias_kernel,
        grid=grid,
        in_specs=[
            pl.BlockSpec((1, cout, tm), lambda i, j: (i, 0, j)),
            pl.BlockSpec((cout, 1), lambda i, j: (0, 0)),
            pl.BlockSpec((cout, 1), lambda i, j: (0, 0)),
        ],
        out_specs=pl.BlockSpec((1, cout, tm), lambda i, j: (i, 0, j)),
        out_shape=jax.ShapeDtypeStruct((n, cout, ms_pad), jnp.float32),
        input_output_aliases={0: 0},                 # normalize in place (P8)
        compiler_params=pltpu.CompilerParams(
            dimension_semantics=("parallel", "parallel"),
            vmem_limit_bytes=vmem_limit,
        ),
        cost_estimate=pl.CostEstimate(
            flops=2 * n * ms_pad * cout,
            transcendentals=0,
            bytes_accessed=2 * n * ms_pad * cout * 4 + 2 * cout * 4,
        ),
    )(y_raw, scale.reshape(cout, 1), bias.reshape(cout, 1))

    # Columns [ms, ms_pad) are padding (value == bias) and are sliced off; the
    # padded buffer must never be consumed directly.  Pure reshape: no XLA
    # transpose pass over y.
    return out[:, :, :ms].reshape(n, cout, d, h, w)


# ---------------------------------------------------------------------------
# Reference + demo
# ---------------------------------------------------------------------------
def _reference(x, weight, gamma, beta, k):
    pad = (k - 1) // 2
    y = jax.lax.conv_general_dilated(
        x,
        weight,
        window_strides=(1, 1, 1),
        padding=[(pad, pad)] * 3,
        dimension_numbers=("NCDHW", "OIDHW", "NCDHW"),
        precision=jax.lax.Precision.HIGHEST,
    )
    mean = jnp.mean(y, axis=(0, 2, 3, 4), keepdims=True)
    var = jnp.mean((y - mean) ** 2, axis=(0, 2, 3, 4), keepdims=True)
    g = gamma.reshape(1, -1, 1, 1, 1)
    b = beta.reshape(1, -1, 1, 1, 1)
    return (y - mean) * jax.lax.rsqrt(var + BN_EPS) * g + b


if __name__ == "__main__":
    # Small shapes consistent with the module: batch=2, in_planes=4,
    # out_planes=8, kernel_size=3, depth 8, spatial 16x16.
    N, CIN, COUT, K, D, H, W = 2, 4, 8, 3, 8, 16, 16

    key = jax.random.PRNGKey(0)
    kx, kw = jax.random.split(key)
    x = jax.random.normal(kx, (N, CIN, D, H, W), dtype=jnp.float32)

    fan_in = CIN * K * K * K
    weight = jax.random.normal(kw, (COUT, CIN, K, K, K), dtype=jnp.float32) * (
        (2.0 / fan_in) ** 0.5
    )
    gamma = jnp.ones((COUT,), jnp.float32)
    beta = jnp.zeros((COUT,), jnp.float32)

    out = conv_bn3d_forward(x, weight, gamma, beta, kernel_size=K)
    out = jax.block_until_ready(out)

    assert out.shape == (N, COUT, D, H, W)

    # Validate against a pure-JAX f32 reference (kernel uses bf16 MXU operands,
    # so allow a modest absolute tolerance on the ~unit-variance output).
    ref = _reference(x, weight, gamma, beta, K)
    max_err = float(jnp.max(jnp.abs(out - ref)))
    assert max_err < 5e-2, f"max abs err vs reference: {max_err}"

    # BatchNorm in train mode => per-channel mean ~ 0.
    ch_mean = jnp.mean(out, axis=(0, 2, 3, 4))
    assert jnp.all(jnp.abs(ch_mean) < 2e-2)

    print("KERNEL_OK")
</pallas_src>

<mosaic_0001>
module attributes {stable_mosaic.version = 11 : i64} {
  func.func @_conv_stats_kernel(%arg0: i32, %arg1: i32, %arg2: memref<1x128x2048xbf16, #tpu.memory_space<vmem>>, %arg3: memref<128x128xbf16, #tpu.memory_space<vmem>>, %arg4: memref<1x8x2048xf32, #tpu.memory_space<vmem>>, %arg5: memref<1x128x1xf32, #tpu.memory_space<vmem>>, %arg6: memref<1x128x1xf32, #tpu.memory_space<vmem>>) attributes {dimension_semantics = [#tpu.dimension_semantics<parallel>, #tpu.dimension_semantics<arbitrary>], iteration_bounds = array<i64: 2, 1>, scalar_prefetch = 0 : i64, scratch_operands = 0 : i64, tpu.core_type = #tpu.core_type<tc>, window_params = [{transform_indices = @transform_0, window_bounds = array<i64: 1, 128, 2048>}, {pipeline_mode = #tpu.pipeline_mode<synchronous>, transform_indices = @transform_1, window_bounds = array<i64: 128, 128>}, {transform_indices = @transform_2, window_bounds = array<i64: 1, 8, 2048>}, {transform_indices = @transform_3, window_bounds = array<i64: 1, 128, 1>}, {transform_indices = @transform_4, window_bounds = array<i64: 1, 128, 1>}]} {
    %c0_i32 = arith.constant 0 : i32
    %0 = arith.cmpi eq, %arg1, %c0_i32 : i32
    %1 = arith.extui %0 : i1 to i32
    %c0_i32_0 = arith.constant 0 : i32
    %2 = arith.cmpi ne, %1, %c0_i32_0 : i32
    scf.if %2 {
      %cst_22 = arith.constant 0.000000e+00 : f32
      %24 = vector.broadcast %cst_22 : f32 to vector<1x128x1xf32>
      %c0_23 = arith.constant 0 : index
      %c0_24 = arith.constant 0 : index
      %c0_25 = arith.constant 0 : index
      %25 = vector.load %arg5[%c0_23, %c0_24, %c0_25] : memref<1x128x1xf32, #tpu.memory_space<vmem>>, vector<1x128x1xf32>
      tpu.vector_store %arg5[%c0_23, %c0_24, %c0_25], %24 {strides = array<i32>} : memref<1x128x1xf32, #tpu.memory_space<vmem>>, vector<1x128x1xf32>,
      %cst_26 = arith.constant 0.000000e+00 : f32
      %26 = vector.broadcast %cst_26 : f32 to vector<1x128x1xf32>
      %c0_27 = arith.constant 0 : index
      %c0_28 = arith.constant 0 : index
      %c0_29 = arith.constant 0 : index
      %27 = vector.load %arg6[%c0_27, %c0_28, %c0_29] : memref<1x128x1xf32, #tpu.memory_space<vmem>>, vector<1x128x1xf32>
      tpu.vector_store %arg6[%c0_27, %c0_28, %c0_29], %26 {strides = array<i32>} : memref<1x128x1xf32, #tpu.memory_space<vmem>>, vector<1x128x1xf32>,
    } else {
    }
    %c0 = arith.constant 0 : index
    %c0_1 = arith.constant 0 : index
    %3 = vector.load %arg3[%c0, %c0_1] : memref<128x128xbf16, #tpu.memory_space<vmem>>, vector<128x128xbf16>
    %c0_2 = arith.constant 0 : index
    %c0_3 = arith.constant 0 : index
    %c0_4 = arith.constant 0 : index
    %4 = vector.load %arg2[%c0_2, %c0_3, %c0_4] : memref<1x128x2048xbf16, #tpu.memory_space<vmem>>, vector<1x128x2048xbf16>
    %5 = vector.shape_cast %4 : vector<1x128x2048xbf16> to vector<128x2048xbf16>
    %cst = arith.constant dense<0.000000e+00> : vector<128x2048xf32>
    %6 = tpu.matmul %3, %5, %cst {dimension_numbers = #tpu.dot_dimension_numbers<[1], [0], [0], [1], [0, 0, 1, 1], [], []>} : vector<128x128xbf16>, vector<128x2048xbf16>, vector<128x2048xf32> -> vector<128x2048xf32>
    %c0_5 = arith.constant 0 : index
    %c0_6 = arith.constant 0 : index
    %c0_7 = arith.constant 0 : index
    %7 = vector.load %arg5[%c0_5, %c0_6, %c0_7] : memref<1x128x1xf32, #tpu.memory_space<vmem>>, vector<1x128x1xf32>
    %cst_8 = arith.constant dense<0.000000e+00> : vector<128xf32>
    %8 = vector.multi_reduction <add>, %6, %cst_8 [1] : vector<128x2048xf32> to vector<128xf32>
    %9 = vector.shape_cast %8 : vector<128xf32> to vector<128x1xf32>
    %10 = vector.shape_cast %9 : vector<128x1xf32> to vector<1x128x1xf32>
    %11 = arith.addf %7, %10 : vector<1x128x1xf32>
    %c0_9 = arith.constant 0 : index
    %c0_10 = arith.constant 0 : index
    %c0_11 = arith.constant 0 : index
    %12 = vector.load %arg5[%c0_9, %c0_10, %c0_11] : memref<1x128x1xf32, #tpu.memory_space<vmem>>, vector<1x128x1xf32>
    tpu.vector_store %arg5[%c0_9, %c0_10, %c0_11], %11 {strides = array<i32>} : memref<1x128x1xf32, #tpu.memory_space<vmem>>, vector<1x128x1xf32>,
    %c0_12 = arith.constant 0 : index
    %c0_13 = arith.constant 0 : index
    %c0_14 = arith.constant 0 : index
    %13 = vector.load %arg6[%c0_12, %c0_13, %c0_14] : memref<1x128x1xf32, #tpu.memory_space<vmem>>, vector<1x128x1xf32>
    %14 = arith.mulf %6, %6 : vector<128x2048xf32>
    %cst_15 = arith.constant dense<0.000000e+00> : vector<128xf32>
    %15 = vector.multi_reduction <add>, %14, %cst_15 [1] : vector<128x2048xf32> to vector<128xf32>
    %16 = vector.shape_cast %15 : vector<128xf32> to vector<128x1xf32>
    %17 = vector.shape_cast %16 : vector<128x1xf32> to vector<1x128x1xf32>
    %18 = arith.addf %13, %17 : vector<1x128x1xf32>
    %c0_16 = arith.constant 0 : index
    %c0_17 = arith.constant 0 : index
    %c0_18 = arith.constant 0 : index
    %19 = vector.load %arg6[%c0_16, %c0_17, %c0_18] : memref<1x128x1xf32, #tpu.memory_space<vmem>>, vector<1x128x1xf32>
    tpu.vector_store %arg6[%c0_16, %c0_17, %c0_18], %18 {strides = array<i32>} : memref<1x128x1xf32, #tpu.memory_space<vmem>>, vector<1x128x1xf32>,
    %20 = vector.extract_strided_slice %6 {offsets = [0, 0], sizes = [8, 2048], strides = [1, 1]} : vector<128x2048xf32> to vector<8x2048xf32>
    %c0_19 = arith.constant 0 : index
    %c0_20 = arith.constant 0 : index
    %c0_21 = arith.constant 0 : index
    %21 = vector.load %arg4[%c0_19, %c0_20, %c0_21] : memref<1x8x2048xf32, #tpu.memory_space<vmem>>, vector<1x8x2048xf32>
    %22 = vector.shape_cast %21 : vector<1x8x2048xf32> to vector<8x2048xf32>
    %23 = vector.shape_cast %20 : vector<8x2048xf32> to vector<1x8x2048xf32>
    tpu.vector_store %arg4[%c0_19, %c0_20, %c0_21], %23 {strides = array<i32>} : memref<1x8x2048xf32, #tpu.memory_space<vmem>>, vector<1x8x2048xf32>,
    return
  }
  func.func @transform_0(%arg0: i32, %arg1: i32) -> (i32, i32, i32) {
    %c0_i32 = arith.constant 0 : i32
    %c0_i32_0 = arith.constant 0 : i32
    return %arg0, %c0_i32, %arg1 : i32, i32, i32
  }
  func.func @transform_1(%arg0: i32, %arg1: i32) -> (i32, i32) {
    %c0_i32 = arith.constant 0 : i32
    %c0_i32_0 = arith.constant 0 : i32
    %c0_i32_1 = arith.constant 0 : i32
    return %c0_i32, %c0_i32_0 : i32, i32
  }
  func.func @transform_2(%arg0: i32, %arg1: i32) -> (i32, i32, i32) {
    %c0_i32 = arith.constant 0 : i32
    %c0_i32_0 = arith.constant 0 : i32
    return %arg0, %c0_i32, %arg1 : i32, i32, i32
  }
  func.func @transform_3(%arg0: i32, %arg1: i32) -> (i32, i32, i32) {
    %c0_i32 = arith.constant 0 : i32
    %c0_i32_0 = arith.constant 0 : i32
    %c0_i32_1 = arith.constant 0 : i32
    return %arg0, %c0_i32, %c0_i32_0 : i32, i32, i32
  }
  func.func @transform_4(%arg0: i32, %arg1: i32) -> (i32, i32, i32) {
    %c0_i32 = arith.constant 0 : i32
    %c0_i32_0 = arith.constant 0 : i32
    %c0_i32_1 = arith.constant 0 : i32
    return %arg0, %c0_i32, %c0_i32_0 : i32, i32, i32
  }
}

module attributes {stable_mosaic.version = 11 : i64} {
  func.func @_scale_bias_kernel(%arg0: i32, %arg1: i32, %arg2: memref<1x8x2048xf32, #tpu.memory_space<vmem>>, %arg3: memref<8x1xf32, #tpu.memory_space<vmem>>, %arg4: memref<8x1xf32, #tpu.memory_space<vmem>>, %arg5: memref<1x8x2048xf32, #tpu.memory_space<vmem>>) attributes {dimension_semantics = [#tpu.dimension_semantics<parallel>, #tpu.dimension_semantics<parallel>], iteration_bounds = array<i64: 2, 1>, scalar_prefetch = 0 : i64, scratch_operands = 0 : i64, tpu.core_type = #tpu.core_type<tc>, window_params = [{transform_indices = @transform_0, window_bounds = array<i64: 1, 8, 2048>}, {pipeline_mode = #tpu.pipeline_mode<synchronous>, transform_indices = @transform_1, window_bounds = array<i64: 8, 1>}, {pipeline_mode = #tpu.pipeline_mode<synchronous>, transform_indices = @transform_2, window_bounds = array<i64: 8, 1>}, {transform_indices = @transform_3, window_bounds = array<i64: 1, 8, 2048>}]} {
    %c0 = arith.constant 0 : index
    %c0_0 = arith.constant 0 : index
    %c0_1 = arith.constant 0 : index
    %0 = vector.load %arg2[%c0, %c0_0, %c0_1] : memref<1x8x2048xf32, #tpu.memory_space<vmem>>, vector<1x8x2048xf32>
    %1 = vector.shape_cast %0 : vector<1x8x2048xf32> to vector<8x2048xf32>
    %c0_2 = arith.constant 0 : index
    %c0_3 = arith.constant 0 : index
    %2 = vector.load %arg3[%c0_2, %c0_3] : memref<8x1xf32, #tpu.memory_space<vmem>>, vector<8x1xf32>
    %3 = vector.broadcast %2 : vector<8x1xf32> to vector<8x2048xf32>
    %4 = arith.mulf %1, %3 : vector<8x2048xf32>
    %c0_4 = arith.constant 0 : index
    %c0_5 = arith.constant 0 : index
    %5 = vector.load %arg4[%c0_4, %c0_5] : memref<8x1xf32, #tpu.memory_space<vmem>>, vector<8x1xf32>
    %6 = vector.broadcast %5 : vector<8x1xf32> to vector<8x2048xf32>
    %7 = arith.addf %4, %6 : vector<8x2048xf32>
    %c0_6 = arith.constant 0 : index
    %c0_7 = arith.constant 0 : index
    %c0_8 = arith.constant 0 : index
    %8 = vector.load %arg5[%c0_6, %c0_7, %c0_8] : memref<1x8x2048xf32, #tpu.memory_space<vmem>>, vector<1x8x2048xf32>
    %9 = vector.shape_cast %8 : vector<1x8x2048xf32> to vector<8x2048xf32>
    %10 = vector.shape_cast %7 : vector<8x2048xf32> to vector<1x8x2048xf32>
    tpu.vector_store %arg5[%c0_6, %c0_7, %c0_8], %10 {strides = array<i32>} : memref<1x8x2048xf32, #tpu.memory_space<vmem>>, vector<1x8x2048xf32>,
    return
  }
  func.func @transform_0(%arg0: i32, %arg1: i32) -> (i32, i32, i32) {
    %c0_i32 = arith.constant 0 : i32
    %c0_i32_0 = arith.constant 0 : i32
    return %arg0, %c0_i32, %arg1 : i32, i32, i32
  }
  func.func @transform_1(%arg0: i32, %arg1: i32) -> (i32, i32) {
    %c0_i32 = arith.constant 0 : i32
    %c0_i32_0 = arith.constant 0 : i32
    %c0_i32_1 = arith.constant 0 : i32
    return %c0_i32, %c0_i32_0 : i32, i32
  }
  func.func @transform_2(%arg0: i32, %arg1: i32) -> (i32, i32) {
    %c0_i32 = arith.constant 0 : i32
    %c0_i32_0 = arith.constant 0 : i32
    %c0_i32_1 = arith.constant 0 : i32
    return %c0_i32, %c0_i32_0 : i32, i32
  }
  func.func @transform_3(%arg0: i32, %arg1: i32) -> (i32, i32, i32) {
    %c0_i32 = arith.constant 0 : i32
    %c0_i32_0 = arith.constant 0 : i32
    return %arg0, %c0_i32, %arg1 : i32, i32, i32
  }
}

</mosaic_0001>

<bundles_post_ra>
// kernel: conv_bn3d_forward.3
= control target key start
LH: loop header
LB: loop body
LE: loop exit
PB: predicated region body
PF: predicated region fallthrough
CT: control target
= control target key end

     0   :  { %s457_s12 = smov 0   ;;  %s459_s13 = smov 0   ;;  %s521_s0 = inlined_call_operand.vmem [shape: f32[2,8,2048], index: 0, kind: input, shape index: {}, may-alias: {0,3}]   ;;  %s522_s1 = inlined_call_operand.vmem [shape: f32[8,1], index: 1, kind: input, shape index: {}]   ;;  %s523_s2 = inlined_call_operand.vmem [shape: f32[8,1], index: 2, kind: input, shape index: {}]   ;;  %s524_s3 = inlined_call_operand.vmem [shape: f32[2,8,2048], index: 3, kind: output, shape index: {}, may-alias: {0,3}]  }
   0x1   :  { %s461_s14 = smov 0  }
   0x2 LB: > { %s25_s15 = sadd.s32 1, %s430_s13  ;;  %p377_p0 = scmp.ge.s32.totalorder %s434_s14, 1  ;;  %s434_s14 = sphi %s461_s14, %s13_s14   ;;  %s430_s13 = sphi %s459_s13, %s526_s13   ;;  %s426_s12 = sphi %s457_s12, %s525_s12  }
   0x3   : > { %p27_p1 = scmp.ge.s32.totalorder %s25_s15, 2  ;;  %p158_p2 = scmp.lt.s32.totalorder %s434_s14, 3 }
   0x5   : > { %s528_s15 = smov (%p27_p1, %s25_s15), 0  ;;  %p159_p3 = pnand %p377_p0, %p158_p2 }
   0x6   : > { %p191_p4 = scmp.lt.s32.totalorder (!%p159_p3), %s426_s12, 1 }
   0x7   : > { %162 = sbr.rel (%p159_p3) target bundleno = 153 (0x99), region = 32 }
   0xc   : > { %v226_v0 = vld [vmem:[%s522_s1] sm:$0xff]  ;;  %v436_v1 = vmov 0   ;;  %s530_s12 = smov (!%p191_p4, %s426_s12), 1 }
   0xd   : > { %411 = vset.pattern.permute.xlu0 %v436_v1  ;;  %v248_v2 = vld [vmem:[%s523_s2] sm:$0xff]  ;;  %s384_s20 = sshll.u32 %s530_s12, 7 }
   0xe   : > { %229 = vperm.xlu0 %411, %v226_v0   ;;  %s198_s23 = scalar_lea.vmem %s521_s0, %s384_s20  ;;  %s494_s26 = scalar_lea.vmem %s524_s3, %s384_s20 }
   0xf   : > { %v210_v3 = vld [vmem:[%s198_s23] sm:$0xff]  ;;  %v211_v4 = vld [vmem:[%s198_s23 + $0x8] sm:$0xff]  ;;  %v212_v5 = vld [vmem:[%s198_s23 + $0x10] sm:$0xff] }
  0x10   : > { %v213_v6 = vld [vmem:[%s198_s23 + $0x18] sm:$0xff]  ;;  %v214_v7 = vld [vmem:[%s198_s23 + $0x20] sm:$0xff]  ;;  %v215_v8 = vld [vmem:[%s198_s23 + $0x28] sm:$0xff] }
  0x11   : > { %v216_v9 = vld [vmem:[%s198_s23 + $0x30] sm:$0xff]  ;;  %v217_v10 = vld [vmem:[%s198_s23 + $0x38] sm:$0xff]  ;;  %v218_v11 = vld [vmem:[%s198_s23 + $0x40] sm:$0xff] }
  0x12   : > { %251 = vperm.xlu0 %411, %v248_v2   ;;  %v219_v12 = vld [vmem:[%s198_s23 + $0x48] sm:$0xff]  ;;  %v220_v14 = vld [vmem:[%s198_s23 + $0x50] sm:$0xff]  ;;  %v221_v15 = vld [vmem:[%s198_s23 + $0x58] sm:$0xff] }
  0x13   : > { %v222_v16 = vld [vmem:[%s198_s23 + $0x60] sm:$0xff]  ;;  %v223_v17 = vld [vmem:[%s198_s23 + $0x68] sm:$0xff]  ;;  %v224_v18 = vld [vmem:[%s198_s23 + $0x70] sm:$0xff] }
  0x14   : > { %v225_v19 = vld [vmem:[%s198_s23 + $0x78] sm:$0xff] }
  0x89   : > { %v230_v13 = vpop.permute.xlu0 %229 }
  0x8a   : > { %v232_v20 = vmul.f32 %v230_v13, %v210_v3  ;;  %v233_v21 = vmul.f32 %v230_v13, %v211_v4  ;;  %v234_v22 = vmul.f32 %v230_v13, %v212_v5  ;;  %v235_v23 = vmul.f32 %v230_v13, %v213_v6 }
  0x8b   : > { %v236_v24 = vmul.f32 %v230_v13, %v214_v7  ;;  %v237_v25 = vmul.f32 %v230_v13, %v215_v8  ;;  %v238_v26 = vmul.f32 %v230_v13, %v216_v9  ;;  %v239_v27 = vmul.f32 %v230_v13, %v217_v10 }
  0x8c   : > { %v240_v28 = vmul.f32 %v230_v13, %v218_v11  ;;  %v241_v29 = vmul.f32 %v230_v13, %v219_v12  ;;  %v242_v30 = vmul.f32 %v230_v13, %v220_v14  ;;  %v243_v31 = vmul.f32 %v230_v13, %v221_v15 }
  0x8d   : > { %v252_v32 = vpop.permute.xlu0 %251  ;;  %v244_v33 = vmul.f32 %v230_v13, %v222_v16  ;;  %v245_v34 = vmul.f32 %v230_v13, %v223_v17  ;;  %v246_v35 = vmul.f32 %v230_v13, %v224_v18  ;;  %v247_v36 = vmul.f32 %v230_v13, %v225_v19 }
  0x8e   : > { %v254_v37 = vadd.f32 %v252_v32, %v232_v20  ;;  %v255_v38 = vadd.f32 %v252_v32, %v233_v21  ;;  %v256_v39 = vadd.f32 %v252_v32, %v234_v22  ;;  %v257_v40 = vadd.f32 %v252_v32, %v235_v23 }
  0x8f   : > { %v258_v41 = vadd.f32 %v252_v32, %v236_v24  ;;  %v259_v42 = vadd.f32 %v252_v32, %v237_v25  ;;  %v260_v43 = vadd.f32 %v252_v32, %v238_v26  ;;  %v261_v44 = vadd.f32 %v252_v32, %v239_v27 }
  0x90   : > { %v262_v45 = vadd.f32 %v252_v32, %v240_v28  ;;  %v263_v46 = vadd.f32 %v252_v32, %v241_v29  ;;  %v264_v47 = vadd.f32 %v252_v32, %v242_v30  ;;  %v265_v48 = vadd.f32 %v252_v32, %v243_v31  ;;  %270 = vst [vmem:[%s494_s26] sm:$0xff] %v254_v37 }
  0x91   : > { %271 = vst [vmem:[%s494_s26 + $0x8] sm:$0xff] %v255_v38  ;;  %272 = vst [vmem:[%s494_s26 + $0x10] sm:$0xff] %v256_v39  ;;  %v266_v49 = vadd.f32 %v252_v32, %v244_v33  ;;  %v267_v50 = vadd.f32 %v252_v32, %v245_v34  ;;  %v268_v51 = vadd.f32 %v252_v32, %v246_v35 }
  0x92   : > { %273 = vst [vmem:[%s494_s26 + $0x18] sm:$0xff] %v257_v40  ;;  %v269_v52 = vadd.f32 %v252_v32, %v247_v36  ;;  %274 = vst [vmem:[%s494_s26 + $0x20] sm:$0xff] %v258_v41 }
  0x93   : > { %275 = vst [vmem:[%s494_s26 + $0x28] sm:$0xff] %v259_v42  ;;  %276 = vst [vmem:[%s494_s26 + $0x30] sm:$0xff] %v260_v43 }
  0x94   : > { %277 = vst [vmem:[%s494_s26 + $0x38] sm:$0xff] %v261_v44  ;;  %278 = vst [vmem:[%s494_s26 + $0x40] sm:$0xff] %v262_v45 }
  0x95   : > { %279 = vst [vmem:[%s494_s26 + $0x48] sm:$0xff] %v263_v46  ;;  %280 = vst [vmem:[%s494_s26 + $0x50] sm:$0xff] %v264_v47 }
  0x96   : > { %281 = vst [vmem:[%s494_s26 + $0x58] sm:$0xff] %v265_v48  ;;  %282 = vst [vmem:[%s494_s26 + $0x60] sm:$0xff] %v266_v49 }
  0x97   : > { %283 = vst [vmem:[%s494_s26 + $0x68] sm:$0xff] %v267_v50  ;;  %284 = vst [vmem:[%s494_s26 + $0x70] sm:$0xff] %v268_v51 }
  0x98   : > { %285 = vst [vmem:[%s494_s26 + $0x78] sm:$0xff] %v269_v52 }
  0x99 PF: > { %s13_s14 = sadd.s32 1, %s434_s14   ;;  %s525_s12 = smov %s430_s13 }
  0x9a   : > { %p10_p5 = scmp.ge.s32.totalorder %s13_s14, 4   ;;  %s526_s13 = smov %s528_s15 }
  0x9c   :  { %12 = sbr.rel (!%p10_p5) target bundleno = 2 (0x2), region = 62 }

// kernel: conv_bn3d_forward.2
= control target key start
LH: loop header
LB: loop body
LE: loop exit
PB: predicated region body
PF: predicated region fallthrough
CT: control target
= control target key end

     0   :  { %s3342_s15 = smov 0   ;;  %s3344_s16 = smov 0   ;;  %s4496_s0 = inlined_call_operand.vmem [shape: bf16[2,128,2048], index: 0, kind: input, shape index: {}]   ;;  %s4497_s1 = inlined_call_operand.vmem [shape: bf16[128,128], index: 1, kind: input, shape index: {}]   ;;  %s4498_s2 = inlined_call_operand.vmem [shape: f32[2,8,2048], index: 2, kind: output, shape index: {0}]   ;;  %s4499_s3 = inlined_call_operand.vmem [shape: f32[2,128,1], index: 3, kind: output, shape index: {1}]   ;;  %s4500_s4 = inlined_call_operand.vmem [shape: f32[2,128,1], index: 4, kind: output, shape index: {2}]  }
   0x1   :  { %s3346_s17 = smov 0  }
   0x2 LB: > { %s27_s18 = sadd.s32 1, %s3309_s16  ;;  %p3106_p0 = scmp.ge.s32.totalorder %s3313_s17, 1  ;;  %s3313_s17 = sphi %s3346_s17, %s15_s17   ;;  %s3309_s16 = sphi %s3344_s16, %s4553_s16   ;;  %s3305_s15 = sphi %s3342_s15, %s4552_s15  }
   0x3   : > { %p29_p1 = scmp.ge.s32.totalorder %s27_s18, 2  ;;  %p188_p2 = scmp.lt.s32.totalorder %s3313_s17, 3 }
   0x5   : > { %s4555_s18 = smov (%p29_p1, %s27_s18), 0  ;;  %p189_p3 = pnand %p3106_p0, %p188_p2 }
   0x7   : > { %192 = sbr.rel (%p189_p3) target bundleno = 654 (0x28e), region = 28 }
   0xc   : > { %p233_p4 = scmp.lt.s32.totalorder %s3305_s15, 1  ;;  %v3315_v0 = vmov 0   ;;  %vm267_vm0 = vcmask 7168  }
   0xd   : > { %1164 = vmatprep.mubr.bf16.mxu0 %v3315_v0  ;;  %1277 = vmatprep.mubr.bf16.mxu1 %v3315_v0 }
   0xe   : > { %s4557_s15 = smov (!%p233_p4, %s3305_s15), 1 }
   0xf   : > { %s3253_s19 = sshll.u32 %s4557_s15, 10  ;;  %s3635_s13 = sshll.u32 %s4557_s15, 7 }
  0x10   : > { %s3368_s22 = scalar_lea.vmem %s4496_s0, %s3253_s19  ;;  %s3641_s20 = scalar_lea.vmem %s4498_s2, %s3635_s13 }
  0x11   : > { %v428_v1 = vld [vmem:[%s3368_s22 + $0x380] sm:$0xff]  ;;  %v429_v3 = vld [vmem:[%s3368_s22 + $0x388] sm:$0xff]  ;;  %v430_v63 = vld [vmem:[%s3368_s22 + $0x390] sm:$0xff]  ;;  %s4239_s25 = scalar_lea.vmem %s4500_s4, %s3635_s13 }
  0x12   : > { %v436_v2 = vld [vmem:[%s3368_s22 + $0x3c0] sm:$0xff]  ;;  %v437_v5 = vld [vmem:[%s3368_s22 + $0x3c8] sm:$0xff] }
  0x13   : > { %v3236_v4 = vcombine.high %v428_v1, %v436_v2  ;;  %v3235_v6 = vcombine.low %v428_v1, %v436_v2  ;;  %v412_v7 = vld [vmem:[%s3368_s22 + $0x300] sm:$0xff]  ;;  %v3238_v9 = vcombine.high %v429_v3, %v437_v5  ;;  %v3237_v10 = vcombine.low %v429_v3, %v437_v5  ;;  %v413_v12 = vld [vmem:[%s3368_s22 + $0x308] sm:$0xff]  ;;  %v438_v1 = vld [vmem:[%s3368_s22 + $0x3d0] sm:$0xff] }
  0x14   : > { %v420_v8 = vld [vmem:[%s3368_s22 + $0x340] sm:$0xff]  ;;  %v421_v13 = vld [vmem:[%s3368_s22 + $0x348] sm:$0xff]  ;;  %v431_v2 = vld [vmem:[%s3368_s22 + $0x398] sm:$0xff] }
  0x15   : > { %v3220_v11 = vcombine.high %v412_v7, %v420_v8  ;;  %v396_v14 = vld [vmem:[%s3368_s22 + $0x280] sm:$0xff]  ;;  %1132 = vmatprep.subr.bf16.mxu0 %v3236_v4  ;;  %v3222_v15 = vcombine.high %v413_v12, %v421_v13  ;;  %v397_v17 = vld [vmem:[%s3368_s22 + $0x288] sm:$0xff]  ;;  %1245 = vmatprep.subr.bf16.mxu1 %v3238_v9  ;;  %v3219_v19 = vcombine.low %v412_v7, %v420_v8  ;;  %v439_v3 = vld [vmem:[%s3368_s22 + $0x3d8] sm:$0xff] }
  0x16   : > { %v404_v16 = vld [vmem:[%s3368_s22 + $0x2c0] sm:$0xff]  ;;  %v405_v18 = vld [vmem:[%s3368_s22 + $0x2c8] sm:$0xff]  ;;  %1133 = vmatpush1.bf16.msra.mxu0 %v3235_v6  ;;  %1246 = vmatpush1.bf16.msra.mxu1 %v3237_v10  ;;  %v3221_v20 = vcombine.low %v413_v12, %v421_v13  ;;  %v3240_v6 = vcombine.high %v430_v63, %v438_v1  ;;  %v3242_v7 = vcombine.high %v431_v2, %v439_v3  ;;  %v414_v9 = vld [vmem:[%s3368_s22 + $0x310] sm:$0xff] }
  0x17   : > { %1134 = vmatprep.subr.bf16.mxu0 %v3220_v11  ;;  %v3204_v21 = vcombine.high %v396_v14, %v404_v16  ;;  %1247 = vmatprep.subr.bf16.mxu1 %v3222_v15  ;;  %v3206_v22 = vcombine.high %v397_v17, %v405_v18  ;;  %v380_v23 = vld [vmem:[%s3368_s22 + $0x200] sm:$0xff]  ;;  %v381_v25 = vld [vmem:[%s3368_s22 + $0x208] sm:$0xff]  ;;  %v3203_v27 = vcombine.low %v396_v14, %v404_v16  ;;  %v422_v10 = vld [vmem:[%s3368_s22 + $0x350] sm:$0xff] }
  0x18   : > { %v388_v24 = vld [vmem:[%s3368_s22 + $0x240] sm:$0xff]  ;;  %v389_v26 = vld [vmem:[%s3368_s22 + $0x248] sm:$0xff]  ;;  %v3205_v28 = vcombine.low %v397_v17, %v405_v18  ;;  %v3239_v11 = vcombine.low %v430_v63, %v438_v1  ;;  %v415_v12 = vld [vmem:[%s3368_s22 + $0x318] sm:$0xff]  ;;  %v3241_v14 = vcombine.low %v431_v2, %v439_v3  ;;  %v3224_v15 = vcombine.high %v414_v9, %v422_v10 }
  0x19   : > { %v3188_v29 = vcombine.high %v380_v23, %v388_v24  ;;  %v3190_v30 = vcombine.high %v381_v25, %v389_v26  ;;  %v364_v31 = vld [vmem:[%s3368_s22 + $0x180] sm:$0xff]  ;;  %v365_v33 = vld [vmem:[%s3368_s22 + $0x188] sm:$0xff]  ;;  %v3187_v35 = vcombine.low %v380_v23, %v388_v24  ;;  %v3189_v36 = vcombine.low %v381_v25, %v389_v26  ;;  %v423_v13 = vld [vmem:[%s3368_s22 + $0x358] sm:$0xff] }
  0x1a   : > { %1135 = vmatpush1.bf16.msra.mxu0 %v3219_v19  ;;  %1248 = vmatpush1.bf16.msra.mxu1 %v3221_v20  ;;  %v372_v32 = vld [vmem:[%s3368_s22 + $0x1c0] sm:$0xff]  ;;  %v373_v34 = vld [vmem:[%s3368_s22 + $0x1c8] sm:$0xff]  ;;  %v398_v16 = vld [vmem:[%s3368_s22 + $0x290] sm:$0xff]  ;;  %v3226_v18 = vcombine.high %v415_v12, %v423_v13 }
  0x1b   : > { %1136 = vmatprep.subr.bf16.mxu0 %v3204_v21  ;;  %1249 = vmatprep.subr.bf16.mxu1 %v3206_v22  ;;  %v3172_v37 = vcombine.high %v364_v31, %v372_v32  ;;  %v3174_v38 = vcombine.high %v365_v33, %v373_v34  ;;  %v348_v39 = vld [vmem:[%s3368_s22 + $0x100] sm:$0xff]  ;;  %v349_v41 = vld [vmem:[%s3368_s22 + $0x108] sm:$0xff]  ;;  %v3171_v43 = vcombine.low %v364_v31, %v372_v32  ;;  %v406_v17 = vld [vmem:[%s3368_s22 + $0x2d0] sm:$0xff] }
  0x1c   : > { %v356_v40 = vld [vmem:[%s3368_s22 + $0x140] sm:$0xff]  ;;  %v357_v42 = vld [vmem:[%s3368_s22 + $0x148] sm:$0xff]  ;;  %v3173_v44 = vcombine.low %v365_v33, %v373_v34  ;;  %v399_v19 = vld [vmem:[%s3368_s22 + $0x298] sm:$0xff]  ;;  %v3223_v21 = vcombine.low %v414_v9, %v422_v10  ;;  %v3225_v22 = vcombine.low %v415_v12, %v423_v13  ;;  %v3208_v23 = vcombine.high %v398_v16, %v406_v17 }
  0x1d   : > { %v3156_v45 = vcombine.high %v348_v39, %v356_v40  ;;  %v3158_v46 = vcombine.high %v349_v41, %v357_v42  ;;  %v332_v47 = vld [vmem:[%s3368_s22 + $0x80] sm:$0xff]  ;;  %v333_v49 = vld [vmem:[%s3368_s22 + $0x88] sm:$0xff]  ;;  %v3155_v51 = vcombine.low %v348_v39, %v356_v40  ;;  %v3157_v52 = vcombine.low %v349_v41, %v357_v42  ;;  %v407_v20 = vld [vmem:[%s3368_s22 + $0x2d8] sm:$0xff] }
  0x1e   : > { %1137 = vmatpush1.bf16.msra.mxu0 %v3203_v27  ;;  %1250 = vmatpush1.bf16.msra.mxu1 %v3205_v28  ;;  %v340_v48 = vld [vmem:[%s3368_s22 + $0xc0] sm:$0xff]  ;;  %v341_v50 = vld [vmem:[%s3368_s22 + $0xc8] sm:$0xff]  ;;  %v3210_v24 = vcombine.high %v399_v19, %v407_v20  ;;  %v382_v26 = vld [vmem:[%s3368_s22 + $0x210] sm:$0xff]  ;;  %v3209_v31 = vcombine.low %v399_v19, %v407_v20 }
  0x1f   : > { %1138 = vmatprep.subr.bf16.mxu0 %v3188_v29  ;;  %1251 = vmatprep.subr.bf16.mxu1 %v3190_v30  ;;  %v3140_v53 = vcombine.high %v332_v47, %v340_v48  ;;  %v3142_v54 = vcombine.high %v333_v49, %v341_v50  ;;  %v316_v55 = vld [vmem:[%s3368_s22] sm:$0xff]  ;;  %v317_v57 = vld [vmem:[%s3368_s22 + $0x8] sm:$0xff]  ;;  %v3139_v59 = vcombine.low %v332_v47, %v340_v48  ;;  %v390_v27 = vld [vmem:[%s3368_s22 + $0x250] sm:$0xff] }
  0x20   : > { %v324_v56 = vld [vmem:[%s3368_s22 + $0x40] sm:$0xff]  ;;  %v325_v58 = vld [vmem:[%s3368_s22 + $0x48] sm:$0xff]  ;;  %v3141_v60 = vcombine.low %v333_v49, %v341_v50  ;;  %v383_v28 = vld [vmem:[%s3368_s22 + $0x218] sm:$0xff]  ;;  %v3207_v30 = vcombine.low %v398_v16, %v406_v17  ;;  %v3192_v32 = vcombine.high %v382_v26, %v390_v27 }
  0x21   : > { %v3124_v61 = vcombine.high %v316_v55, %v324_v56  ;;  %v3126_v62 = vcombine.high %v317_v57, %v325_v58  ;;  %v3123_v4 = vcombine.low %v316_v55, %v324_v56  ;;  %v3125_v5 = vcombine.low %v317_v57, %v325_v58  ;;  %v3409_v8 = vld [vmem:[%s4497_s1] sm:$0xff]   ;;  %v3426_v25 = vld [vmem:[%s4497_s1 + $0x8] sm:$0xff]   ;;  %v391_v29 = vld [vmem:[%s3368_s22 + $0x258] sm:$0xff] }
  0x22   : > { %1139 = vmatpush1.bf16.msra.mxu0 %v3187_v35  ;;  %1252 = vmatpush1.bf16.msra.mxu1 %v3189_v36  ;;  %v3194_v33 = vcombine.high %v383_v28, %v391_v29  ;;  %v366_v34 = vld [vmem:[%s3368_s22 + $0x190] sm:$0xff]  ;;  %v367_v36 = vld [vmem:[%s3368_s22 + $0x198] sm:$0xff]  ;;  %v3193_v39 = vcombine.low %v383_v28, %v391_v29  ;;  %v441_v9 = vld [vmem:[%s3368_s22 + $0x3e8] sm:$0xff] }
  0x23   : > { %1140 = vmatprep.subr.bf16.mxu0 %v3172_v37  ;;  %1253 = vmatprep.subr.bf16.mxu1 %v3174_v38  ;;  %v374_v35 = vld [vmem:[%s3368_s22 + $0x1d0] sm:$0xff]  ;;  %v375_v37 = vld [vmem:[%s3368_s22 + $0x1d8] sm:$0xff]  ;;  %v3191_v38 = vcombine.low %v382_v26, %v390_v27  ;;  %v3477_v13 = vld [vmem:[%s4497_s1 + $0x20] sm:$0xff]  }
  0x24   : > { %v3176_v40 = vcombine.high %v366_v34, %v374_v35  ;;  %v3443_v41 = vld [vmem:[%s4497_s1 + $0x10] sm:$0xff]   ;;  %v3178_v42 = vcombine.high %v367_v36, %v375_v37  ;;  %v3175_v47 = vcombine.low %v366_v34, %v374_v35  ;;  %v3177_v48 = vcombine.low %v367_v36, %v375_v37  ;;  %v3460_v58 = vld [vmem:[%s4497_s1 + $0x18] sm:$0xff]   ;;  %v424_v19 = vld [vmem:[%s3368_s22 + $0x360] sm:$0xff] }
  0x25   : > { %v327_v63 = vld [vmem:[%s3368_s22 + $0x58] sm:$0xff]  ;;  %v3495_v16 = vld [vmem:[%s4497_s1 + $0x30] sm:$0xff]   ;;  %v400_v26 = vld [vmem:[%s3368_s22 + $0x2a0] sm:$0xff] }
  0x26   : > { %1141 = vmatpush1.bf16.msra.mxu0 %v3171_v43  ;;  %1254 = vmatpush1.bf16.msra.mxu1 %v3173_v44  ;;  %v350_v43 = vld [vmem:[%s3368_s22 + $0x110] sm:$0xff]  ;;  %v3504_v17 = vld [vmem:[%s4497_s1 + $0x38] sm:$0xff]   ;;  %v408_v27 = vld [vmem:[%s3368_s22 + $0x2e0] sm:$0xff] }
  0x27   : > { %1142 = vmatprep.subr.bf16.mxu0 %v3156_v45  ;;  %1255 = vmatprep.subr.bf16.mxu1 %v3158_v46  ;;  %v358_v44 = vld [vmem:[%s3368_s22 + $0x150] sm:$0xff]  ;;  %v351_v45 = vld [vmem:[%s3368_s22 + $0x118] sm:$0xff]  ;;  %v401_v29 = vld [vmem:[%s3368_s22 + $0x2a8] sm:$0xff] }
  0x28   : > { %v359_v46 = vld [vmem:[%s3368_s22 + $0x158] sm:$0xff]  ;;  %v3160_v49 = vcombine.high %v350_v43, %v358_v44  ;;  %v3159_v55 = vcombine.low %v350_v43, %v358_v44  ;;  %v384_v35 = vld [vmem:[%s3368_s22 + $0x220] sm:$0xff]  ;;  %v385_v37 = vld [vmem:[%s3368_s22 + $0x228] sm:$0xff] }
  0x29   : > { %v3162_v50 = vcombine.high %v351_v45, %v359_v46  ;;  %v3161_v56 = vcombine.low %v351_v45, %v359_v46  ;;  %v392_v36 = vld [vmem:[%s3368_s22 + $0x260] sm:$0xff]  ;;  %v369_v46 = vld [vmem:[%s3368_s22 + $0x1a8] sm:$0xff] }
  0x2a   : > { %1143 = vmatpush1.bf16.msra.mxu0 %v3155_v51  ;;  %1256 = vmatpush1.bf16.msra.mxu1 %v3157_v52  ;;  %v334_v51 = vld [vmem:[%s3368_s22 + $0x90] sm:$0xff]  ;;  %v368_v44 = vld [vmem:[%s3368_s22 + $0x1a0] sm:$0xff] }
  0x2b   : > { %1144 = vmatprep.subr.bf16.mxu0 %v3140_v53  ;;  %1257 = vmatprep.subr.bf16.mxu1 %v3142_v54  ;;  %v342_v52 = vld [vmem:[%s3368_s22 + $0xd0] sm:$0xff]  ;;  %v335_v53 = vld [vmem:[%s3368_s22 + $0x98] sm:$0xff]  ;;  %v376_v45 = vld [vmem:[%s3368_s22 + $0x1e0] sm:$0xff] }
  0x2c   : > { %v343_v54 = vld [vmem:[%s3368_s22 + $0xd8] sm:$0xff]  ;;  %v3144_v57 = vcombine.high %v334_v51, %v342_v52  ;;  %v3143_v1 = vcombine.low %v334_v51, %v342_v52  ;;  %v352_v52 = vld [vmem:[%s3368_s22 + $0x120] sm:$0xff] }
  0x2d   : > { %v3145_v2 = vcombine.low %v335_v53, %v343_v54 }
  0x2e   : > { %1145 = vmatpush1.bf16.msra.mxu0 %v3139_v59  ;;  %1258 = vmatpush1.bf16.msra.mxu1 %v3141_v60  ;;  %v3146_v59 = vcombine.high %v335_v53, %v343_v54  ;;  %v318_v60 = vld [vmem:[%s3368_s22 + $0x10] sm:$0xff]  ;;  %v360_v53 = vld [vmem:[%s3368_s22 + $0x160] sm:$0xff]  ;;  %v353_v54 = vld [vmem:[%s3368_s22 + $0x128] sm:$0xff] }
  0x2f   : > { %1146 = vmatprep.subr.bf16.mxu0 %v3124_v61  ;;  %1259 = vmatprep.subr.bf16.mxu1 %v3126_v62  ;;  %v326_v61 = vld [vmem:[%s3368_s22 + $0x50] sm:$0xff]  ;;  %v319_v62 = vld [vmem:[%s3368_s22 + $0x18] sm:$0xff] }
  0x30   : > { %v3128_v3 = vcombine.high %v318_v60, %v326_v61  ;;  %v3127_v10 = vcombine.low %v318_v60, %v326_v61  ;;  %v336_v61 = vld [vmem:[%s3368_s22 + $0xa0] sm:$0xff] }
  0x32   : > { %1147 = vmatpush1.bf16.msra.mxu0 %v3123_v4  ;;  %1260 = vmatpush1.bf16.msra.mxu1 %v3125_v5  ;;  %v3130_v4 = vcombine.high %v319_v62, %v327_v63  ;;  %v432_v5 = vld [vmem:[%s3368_s22 + $0x3a0] sm:$0xff] }
  0x33   : > { %1358 = vmatprep.subr.bf16.mxu0 %v3240_v6  ;;  %1471 = vmatprep.subr.bf16.mxu1 %v3242_v7  ;;  %v440_v6 = vld [vmem:[%s3368_s22 + $0x3e0] sm:$0xff]  ;;  %v433_v7 = vld [vmem:[%s3368_s22 + $0x3a8] sm:$0xff] }
  0x34   : > { %v3244_v12 = vcombine.high %v432_v5, %v440_v6  ;;  %v3243_v20 = vcombine.low %v432_v5, %v440_v6  ;;  %v320_v6 = vld [vmem:[%s3368_s22 + $0x20] sm:$0xff] }
  0x35   : > { %1165 = vmatmul.mubr.bf16.vlgmr.msra.gmra.mxu0 %v3409_v8  ;;  %1278 = vmatmul.mubr.bf16.vlgmr.msra.gmra.mxu1 %v3409_v8 }
  0x36   : > { %1359 = vmatpush1.bf16.msra.mxu0 %v3239_v11  ;;  %1472 = vmatpush1.bf16.msra.mxu1 %v3241_v14  ;;  %v3129_v11 = vcombine.low %v319_v62, %v327_v63  ;;  %v3246_v14 = vcombine.high %v433_v7, %v441_v9  ;;  %v344_v62 = vld [vmem:[%s3368_s22 + $0xe0] sm:$0xff]  ;;  %v337_v63 = vld [vmem:[%s3368_s22 + $0xa8] sm:$0xff] }
  0x37   : > { %1174 = vmatprep.mubr.bf16.mxu0 %v3315_v0  ;;  %1287 = vmatprep.mubr.bf16.mxu1 %v3315_v0 }
  0x38   : > { %1360 = vmatprep.subr.bf16.mxu0 %v3224_v15  ;;  %1473 = vmatprep.subr.bf16.mxu1 %v3226_v18  ;;  %v3486_v15 = vld [vmem:[%s4497_s1 + $0x28] sm:$0xff]   ;;  %v416_v18 = vld [vmem:[%s3368_s22 + $0x320] sm:$0xff] }
  0x3a   : > { %1361 = vmatpush1.bf16.msra.mxu0 %v3223_v21  ;;  %1474 = vmatpush1.bf16.msra.mxu1 %v3225_v22  ;;  %v417_v21 = vld [vmem:[%s3368_s22 + $0x328] sm:$0xff] }
  0x3b   : > { %1362 = vmatprep.subr.bf16.mxu0 %v3208_v23  ;;  %1475 = vmatprep.subr.bf16.mxu1 %v3210_v24  ;;  %v425_v22 = vld [vmem:[%s3368_s22 + $0x368] sm:$0xff]  ;;  %v3245_v23 = vcombine.low %v433_v7, %v441_v9  ;;  %v3228_v24 = vcombine.high %v416_v18, %v424_v19  ;;  %v328_v7 = vld [vmem:[%s3368_s22 + $0x60] sm:$0xff] }
  0x3c   : > { %v3230_v28 = vcombine.high %v417_v21, %v425_v22  ;;  %v321_v9 = vld [vmem:[%s3368_s22 + $0x28] sm:$0xff] }
  0x3d   : > { %1175 = vmatmul.mubr.bf16.gmra.mxu0 %v3426_v25  ;;  %1288 = vmatmul.mubr.bf16.gmra.mxu1 %v3426_v25 }
  0x3e   : > { %1184 = vmatprep.mubr.bf16.mxu0 %v3315_v0  ;;  %1297 = vmatprep.mubr.bf16.mxu1 %v3315_v0 }
  0x3f   : > { %1363 = vmatpush1.bf16.msra.mxu0 %v3207_v30  ;;  %1476 = vmatpush1.bf16.msra.mxu1 %v3209_v31  ;;  %v409_v30 = vld [vmem:[%s3368_s22 + $0x2e8] sm:$0xff]  ;;  %v3227_v31 = vcombine.low %v416_v18, %v424_v19  ;;  %v434_v19 = vld [vmem:[%s3368_s22 + $0x3b0] sm:$0xff] }
  0x40   : > { %1364 = vmatprep.subr.bf16.mxu0 %v3192_v32  ;;  %1477 = vmatprep.subr.bf16.mxu1 %v3194_v33  ;;  %v3229_v32 = vcombine.low %v417_v21, %v425_v22  ;;  %v3212_v33 = vcombine.high %v400_v26, %v408_v27  ;;  %v3214_v34 = vcombine.high %v401_v29, %v409_v30  ;;  %v435_v21 = vld [vmem:[%s3368_s22 + $0x3b8] sm:$0xff] }
  0x41   : > { %v443_v22 = vld [vmem:[%s3368_s22 + $0x3f8] sm:$0xff] }
  0x43   : > { %1365 = vmatpush1.bf16.msra.mxu0 %v3191_v38  ;;  %1478 = vmatpush1.bf16.msra.mxu1 %v3193_v39  ;;  %v393_v38 = vld [vmem:[%s3368_s22 + $0x268] sm:$0xff]  ;;  %v3211_v39 = vcombine.low %v400_v26, %v408_v27  ;;  %v3250_v27 = vcombine.high %v435_v21, %v443_v22 }
  0x44   : > { %1366 = vmatprep.subr.bf16.mxu0 %v3176_v40  ;;  %1479 = vmatprep.subr.bf16.mxu1 %v3178_v42  ;;  %v3213_v40 = vcombine.low %v401_v29, %v409_v30  ;;  %v3196_v42 = vcombine.high %v384_v35, %v392_v36  ;;  %v3198_v43 = vcombine.high %v385_v37, %v393_v38  ;;  %v426_v29 = vld [vmem:[%s3368_s22 + $0x370] sm:$0xff] }
  0x45   : > { %1185 = vmatmul.mubr.bf16.gmra.mxu0 %v3443_v41  ;;  %1298 = vmatmul.mubr.bf16.gmra.mxu1 %v3443_v41 }
  0x46   : > { %1194 = vmatprep.mubr.bf16.mxu0 %v3315_v0  ;;  %1307 = vmatprep.mubr.bf16.mxu1 %v3315_v0 }
  0x47   : > { %1367 = vmatpush1.bf16.msra.mxu0 %v3175_v47  ;;  %1480 = vmatpush1.bf16.msra.mxu1 %v3177_v48  ;;  %v377_v47 = vld [vmem:[%s3368_s22 + $0x1e8] sm:$0xff]  ;;  %v3195_v48 = vcombine.low %v384_v35, %v392_v36  ;;  %v402_v35 = vld [vmem:[%s3368_s22 + $0x2b0] sm:$0xff] }
  0x48   : > { %1368 = vmatprep.subr.bf16.mxu0 %v3160_v49  ;;  %1481 = vmatprep.subr.bf16.mxu1 %v3162_v50  ;;  %v3197_v49 = vcombine.low %v385_v37, %v393_v38  ;;  %v3180_v50 = vcombine.high %v368_v44, %v376_v45  ;;  %v3182_v51 = vcombine.high %v369_v46, %v377_v47  ;;  %v410_v36 = vld [vmem:[%s3368_s22 + $0x2f0] sm:$0xff]  ;;  %v403_v38 = vld [vmem:[%s3368_s22 + $0x2b8] sm:$0xff] }
  0x4b   : > { %1369 = vmatpush1.bf16.msra.mxu0 %v3159_v55  ;;  %1482 = vmatpush1.bf16.msra.mxu1 %v3161_v56  ;;  %v361_v55 = vld [vmem:[%s3368_s22 + $0x168] sm:$0xff]  ;;  %v3179_v56 = vcombine.low %v368_v44, %v376_v45  ;;  %v386_v45 = vld [vmem:[%s3368_s22 + $0x230] sm:$0xff] }
  0x4c   : > { %1370 = vmatprep.subr.bf16.mxu0 %v3144_v57  ;;  %1483 = vmatprep.subr.bf16.mxu1 %v3146_v59  ;;  %v3181_v57 = vcombine.low %v369_v46, %v377_v47  ;;  %v3164_v59 = vcombine.high %v352_v52, %v360_v53  ;;  %v3166_v60 = vcombine.high %v353_v54, %v361_v55  ;;  %v394_v46 = vld [vmem:[%s3368_s22 + $0x270] sm:$0xff]  ;;  %v387_v47 = vld [vmem:[%s3368_s22 + $0x238] sm:$0xff] }
  0x4d   : > { %1195 = vmatmul.mubr.bf16.gmra.mxu0 %v3460_v58  ;;  %1308 = vmatmul.mubr.bf16.gmra.mxu1 %v3460_v58 }
  0x4e   : > { %1204 = vmatprep.mubr.bf16.mxu0 %v3315_v0  ;;  %1317 = vmatprep.mubr.bf16.mxu1 %v3315_v0 }
  0x4f   : > { %1371 = vmatpush1.bf16.msra.mxu0 %v3143_v1  ;;  %1484 = vmatpush1.bf16.msra.mxu1 %v3145_v2  ;;  %v345_v1 = vld [vmem:[%s3368_s22 + $0xe8] sm:$0xff]  ;;  %v3163_v2 = vcombine.low %v352_v52, %v360_v53  ;;  %v370_v53 = vld [vmem:[%s3368_s22 + $0x1b0] sm:$0xff] }
  0x50   : > { %1372 = vmatprep.subr.bf16.mxu0 %v3128_v3  ;;  %1485 = vmatprep.subr.bf16.mxu1 %v3130_v4  ;;  %v3165_v3 = vcombine.low %v353_v54, %v361_v55  ;;  %v3148_v4 = vcombine.high %v336_v61, %v344_v62  ;;  %v3150_v5 = vcombine.high %v337_v63, %v345_v1  ;;  %v378_v54 = vld [vmem:[%s3368_s22 + $0x1f0] sm:$0xff]  ;;  %v371_v55 = vld [vmem:[%s3368_s22 + $0x1b8] sm:$0xff] }
  0x53   : > { %1373 = vmatpush1.bf16.msra.mxu0 %v3127_v10  ;;  %1486 = vmatpush1.bf16.msra.mxu1 %v3129_v11  ;;  %v329_v10 = vld [vmem:[%s3368_s22 + $0x68] sm:$0xff]  ;;  %v3147_v11 = vcombine.low %v336_v61, %v344_v62  ;;  %v354_v62 = vld [vmem:[%s3368_s22 + $0x130] sm:$0xff] }
  0x54   : > { %1584 = vmatprep.subr.bf16.mxu0 %v3244_v12  ;;  %1697 = vmatprep.subr.bf16.mxu1 %v3246_v14  ;;  %v3149_v12 = vcombine.low %v337_v63, %v345_v1  ;;  %v3132_v14 = vcombine.high %v320_v6, %v328_v7  ;;  %v3134_v18 = vcombine.high %v321_v9, %v329_v10  ;;  %v362_v63 = vld [vmem:[%s3368_s22 + $0x170] sm:$0xff]  ;;  %v355_v1 = vld [vmem:[%s3368_s22 + $0x138] sm:$0xff] }
  0x55   : > { %1205 = vmatmul.mubr.bf16.gmra.mxu0 %v3477_v13  ;;  %1318 = vmatmul.mubr.bf16.gmra.mxu1 %v3477_v13 }
  0x56   : > { %1214 = vmatprep.mubr.bf16.mxu0 %v3315_v0  ;;  %1327 = vmatprep.mubr.bf16.mxu1 %v3315_v0 }
  0x5d   : > { %1215 = vmatmul.mubr.bf16.gmra.mxu0 %v3486_v15  ;;  %1328 = vmatmul.mubr.bf16.gmra.mxu1 %v3486_v15 }
  0x5e   : > { %1224 = vmatprep.mubr.bf16.mxu0 %v3315_v0  ;;  %1337 = vmatprep.mubr.bf16.mxu1 %v3315_v0 }
  0x65   : > { %1225 = vmatmul.mubr.bf16.gmra.mxu0 %v3495_v16  ;;  %1338 = vmatmul.mubr.bf16.gmra.mxu1 %v3495_v16 }
  0x66   : > { %1234 = vmatprep.mubr.bf16.mxu0 %v3315_v0  ;;  %1347 = vmatprep.mubr.bf16.mxu1 %v3315_v0 }
  0x6d   : > { %1235 = vmatmul.mubr.bf16.gmra.mxu0 %v3504_v17  ;;  %1348 = vmatmul.mubr.bf16.gmra.mxu1 %v3504_v17 }
  0x6e   : > { %1390 = vmatprep.mubr.bf16.mxu0 %v3315_v0  ;;  %1503 = vmatprep.mubr.bf16.mxu1 %v3315_v0 }
  0x75   : > { %1391 = vmatmul.mubr.bf16.vlgmr.msra.gmra.mxu0 %v3409_v8  ;;  %1504 = vmatmul.mubr.bf16.vlgmr.msra.gmra.mxu1 %v3409_v8 }
  0x76   : > { %1585 = vmatpush1.bf16.msra.mxu0 %v3243_v20  ;;  %1698 = vmatpush1.bf16.msra.mxu1 %v3245_v23  ;;  %v442_v20 = vld [vmem:[%s3368_s22 + $0x3f0] sm:$0xff]  ;;  %v3131_v23 = vcombine.low %v320_v6, %v328_v7 }
  0x77   : > { %1400 = vmatprep.mubr.bf16.mxu0 %v3315_v0  ;;  %1513 = vmatprep.mubr.bf16.mxu1 %v3315_v0  ;;  %v3248_v26 = vcombine.high %v434_v19, %v442_v20  ;;  %v3247_v30 = vcombine.low %v434_v19, %v442_v20  ;;  %v338_v7 = vld [vmem:[%s3368_s22 + $0xb0] sm:$0xff] }
  0x78   : > { %1586 = vmatprep.subr.bf16.mxu0 %v3228_v24  ;;  %1699 = vmatprep.subr.bf16.mxu1 %v3230_v28  ;;  %v3133_v24 = vcombine.low %v321_v9, %v329_v10  ;;  %v418_v28 = vld [vmem:[%s3368_s22 + $0x330] sm:$0xff]  ;;  %v339_v10 = vld [vmem:[%s3368_s22 + $0xb8] sm:$0xff] }
  0x79   : > { %v346_v9 = vld [vmem:[%s3368_s22 + $0xf0] sm:$0xff] }
  0x7a   : > { %1587 = vmatpush1.bf16.msra.mxu0 %v3227_v31  ;;  %1700 = vmatpush1.bf16.msra.mxu1 %v3229_v32  ;;  %v419_v31 = vld [vmem:[%s3368_s22 + $0x338] sm:$0xff]  ;;  %v322_v20 = vld [vmem:[%s3368_s22 + $0x30] sm:$0xff] }
  0x7b   : > { %1588 = vmatprep.subr.bf16.mxu0 %v3212_v33  ;;  %1701 = vmatprep.subr.bf16.mxu1 %v3214_v34  ;;  %v427_v32 = vld [vmem:[%s3368_s22 + $0x378] sm:$0xff]  ;;  %v3249_v33 = vcombine.low %v435_v21, %v443_v22  ;;  %v3232_v34 = vcombine.high %v418_v28, %v426_v29  ;;  %v330_v21 = vld [vmem:[%s3368_s22 + $0x70] sm:$0xff] }
  0x7c   : > { %v3234_v37 = vcombine.high %v419_v31, %v427_v32  ;;  %v323_v22 = vld [vmem:[%s3368_s22 + $0x38] sm:$0xff] }
  0x7d   : > { %1401 = vmatmul.mubr.bf16.gmra.mxu0 %v3426_v25  ;;  %1514 = vmatmul.mubr.bf16.gmra.mxu1 %v3426_v25 }
  0x7e   : > { %1410 = vmatprep.mubr.bf16.mxu0 %v3315_v0  ;;  %1523 = vmatprep.mubr.bf16.mxu1 %v3315_v0 }
  0x7f   : > { %1589 = vmatpush1.bf16.msra.mxu0 %v3211_v39  ;;  %1702 = vmatpush1.bf16.msra.mxu1 %v3213_v40  ;;  %v411_v39 = vld [vmem:[%s3368_s22 + $0x2f8] sm:$0xff]  ;;  %v3231_v40 = vcombine.low %v418_v28, %v426_v29  ;;  %v3135_v29 = vcombine.low %v322_v20, %v330_v21 }
  0x80   : > { %1590 = vmatprep.subr.bf16.mxu0 %v3196_v42  ;;  %1703 = vmatprep.subr.bf16.mxu1 %v3198_v43  ;;  %v3233_v42 = vcombine.low %v419_v31, %v427_v32  ;;  %v3216_v43 = vcombine.high %v402_v35, %v410_v36  ;;  %v3218_v44 = vcombine.high %v403_v38, %v411_v39 }
  0x83   : > { %1591 = vmatpush1.bf16.msra.mxu0 %v3195_v48  ;;  %1704 = vmatpush1.bf16.msra.mxu1 %v3197_v49  ;;  %v395_v48 = vld [vmem:[%s3368_s22 + $0x278] sm:$0xff]  ;;  %v3215_v49 = vcombine.low %v402_v35, %v410_v36 }
  0x84   : > { %1592 = vmatprep.subr.bf16.mxu0 %v3180_v50  ;;  %1705 = vmatprep.subr.bf16.mxu1 %v3182_v51  ;;  %v3217_v50 = vcombine.low %v403_v38, %v411_v39  ;;  %v3200_v51 = vcombine.high %v386_v45, %v394_v46  ;;  %v3202_v52 = vcombine.high %v387_v47, %v395_v48 }
  0x85   : > { %1411 = vmatmul.mubr.bf16.gmra.mxu0 %v3443_v41  ;;  %1524 = vmatmul.mubr.bf16.gmra.mxu1 %v3443_v41 }
  0x86   : > { %1420 = vmatprep.mubr.bf16.mxu0 %v3315_v0  ;;  %1533 = vmatprep.mubr.bf16.mxu1 %v3315_v0 }
  0x87   : > { %1593 = vmatpush1.bf16.msra.mxu0 %v3179_v56  ;;  %1706 = vmatpush1.bf16.msra.mxu1 %v3181_v57  ;;  %v379_v56 = vld [vmem:[%s3368_s22 + $0x1f8] sm:$0xff]  ;;  %v3199_v57 = vcombine.low %v386_v45, %v394_v46 }
  0x88   : > { %1594 = vmatprep.subr.bf16.mxu0 %v3164_v59  ;;  %1707 = vmatprep.subr.bf16.mxu1 %v3166_v60  ;;  %v3201_v59 = vcombine.low %v387_v47, %v395_v48  ;;  %v3184_v60 = vcombine.high %v370_v53, %v378_v54  ;;  %v3186_v61 = vcombine.high %v371_v55, %v379_v56 }
  0x8b   : > { %1595 = vmatpush1.bf16.msra.mxu0 %v3163_v2  ;;  %1708 = vmatpush1.bf16.msra.mxu1 %v3165_v3  ;;  %v363_v2 = vld [vmem:[%s3368_s22 + $0x178] sm:$0xff]  ;;  %v3183_v3 = vcombine.low %v370_v53, %v378_v54 }
  0x8c   : > { %1596 = vmatprep.subr.bf16.mxu0 %v3148_v4  ;;  %1709 = vmatprep.subr.bf16.mxu1 %v3150_v5  ;;  %v3185_v4 = vcombine.low %v371_v55, %v379_v56  ;;  %v3168_v5 = vcombine.high %v354_v62, %v362_v63  ;;  %v3170_v6 = vcombine.high %v355_v1, %v363_v2 }
  0x8d   : > { %1421 = vmatmul.mubr.bf16.gmra.mxu0 %v3460_v58  ;;  %1534 = vmatmul.mubr.bf16.gmra.mxu1 %v3460_v58 }
  0x8e   : > { %1430 = vmatprep.mubr.bf16.mxu0 %v3315_v0  ;;  %1543 = vmatprep.mubr.bf16.mxu1 %v3315_v0 }
  0x8f   : > { %1597 = vmatpush1.bf16.msra.mxu0 %v3147_v11  ;;  %1710 = vmatpush1.bf16.msra.mxu1 %v3149_v12  ;;  %v347_v11 = vld [vmem:[%s3368_s22 + $0xf8] sm:$0xff]  ;;  %v3167_v12 = vcombine.low %v354_v62, %v362_v63 }
  0x90   : > { %1598 = vmatprep.subr.bf16.mxu0 %v3132_v14  ;;  %1711 = vmatprep.subr.bf16.mxu1 %v3134_v18  ;;  %v3169_v14 = vcombine.low %v355_v1, %v363_v2  ;;  %v3152_v18 = vcombine.high %v338_v7, %v346_v9  ;;  %v3154_v19 = vcombine.high %v339_v10, %v347_v11 }
  0x93   : > { %1599 = vmatpush1.bf16.msra.mxu0 %v3131_v23  ;;  %1712 = vmatpush1.bf16.msra.mxu1 %v3133_v24  ;;  %v331_v23 = vld [vmem:[%s3368_s22 + $0x78] sm:$0xff]  ;;  %v3151_v24 = vcombine.low %v338_v7, %v346_v9  ;;  %s3871_s22 = scalar_lea.vmem %s4499_s3, %s3635_s13 }
  0x94   : > { %1810 = vmatprep.subr.bf16.mxu0 %v3248_v26  ;;  %1923 = vmatprep.subr.bf16.mxu1 %v3250_v27  ;;  %v3153_v26 = vcombine.low %v339_v10, %v347_v11  ;;  %v3136_v27 = vcombine.high %v322_v20, %v330_v21  ;;  %v3138_v28 = vcombine.high %v323_v22, %v331_v23 }
  0x95   : > { %1431 = vmatmul.mubr.bf16.gmra.mxu0 %v3477_v13  ;;  %1544 = vmatmul.mubr.bf16.gmra.mxu1 %v3477_v13 }
  0x96   : > { %1440 = vmatprep.mubr.bf16.mxu0 %v3315_v0  ;;  %1553 = vmatprep.mubr.bf16.mxu1 %v3315_v0 }
  0x9d   : > { %1441 = vmatmul.mubr.bf16.gmra.mxu0 %v3486_v15  ;;  %1554 = vmatmul.mubr.bf16.gmra.mxu1 %v3486_v15 }
  0x9e   : > { %1450 = vmatprep.mubr.bf16.mxu0 %v3315_v0  ;;  %1563 = vmatprep.mubr.bf16.mxu1 %v3315_v0 }
  0xa5   : > { %1451 = vmatmul.mubr.bf16.gmra.mxu0 %v3495_v16  ;;  %1564 = vmatmul.mubr.bf16.gmra.mxu1 %v3495_v16 }
  0xa6   : > { %1460 = vmatprep.mubr.bf16.mxu0 %v3315_v0  ;;  %1573 = vmatprep.mubr.bf16.mxu1 %v3315_v0 }
  0xad   : > { %1461 = vmatmul.mubr.bf16.gmra.mxu0 %v3504_v17  ;;  %1574 = vmatmul.mubr.bf16.gmra.mxu1 %v3504_v17 }
  0xae   : > { %1616 = vmatprep.mubr.bf16.mxu0 %v3315_v0  ;;  %1729 = vmatprep.mubr.bf16.mxu1 %v3315_v0 }
  0xb5   : > { %1617 = vmatmul.mubr.bf16.vlgmr.msra.gmra.mxu0 %v3409_v8  ;;  %1730 = vmatmul.mubr.bf16.vlgmr.msra.gmra.mxu1 %v3409_v8 }
  0xb6   : > { %1811 = vmatpush1.bf16.msra.mxu0 %v3247_v30  ;;  %1924 = vmatpush1.bf16.msra.mxu1 %v3249_v33  ;;  %v3137_v30 = vcombine.low %v323_v22, %v331_v23 }
  0xb7   : > { %1626 = vmatprep.mubr.bf16.mxu0 %v3315_v0  ;;  %1739 = vmatprep.mubr.bf16.mxu1 %v3315_v0 }
  0xb8   : > { %1812 = vmatprep.subr.bf16.mxu0 %v3232_v34  ;;  %1925 = vmatprep.subr.bf16.mxu1 %v3234_v37 }
  0xba   : > { %1813 = vmatpush1.bf16.msra.mxu0 %v3231_v40  ;;  %1926 = vmatpush1.bf16.msra.mxu1 %v3233_v42 }
  0xbb   : > { %1814 = vmatprep.subr.bf16.mxu0 %v3216_v43  ;;  %1927 = vmatprep.subr.bf16.mxu1 %v3218_v44 }
  0xbd   : > { %1627 = vmatmul.mubr.bf16.gmra.mxu0 %v3426_v25  ;;  %1740 = vmatmul.mubr.bf16.gmra.mxu1 %v3426_v25 }
  0xbe   : > { %1636 = vmatprep.mubr.bf16.mxu0 %v3315_v0  ;;  %1749 = vmatprep.mubr.bf16.mxu1 %v3315_v0 }
  0xbf   : > { %1815 = vmatpush1.bf16.msra.mxu0 %v3215_v49  ;;  %1928 = vmatpush1.bf16.msra.mxu1 %v3217_v50 }
  0xc0   : > { %1816 = vmatprep.subr.bf16.mxu0 %v3200_v51  ;;  %1929 = vmatprep.subr.bf16.mxu1 %v3202_v52 }
  0xc3   : > { %1817 = vmatpush1.bf16.msra.mxu0 %v3199_v57  ;;  %1930 = vmatpush1.bf16.msra.mxu1 %v3201_v59 }
  0xc4   : > { %1818 = vmatprep.subr.bf16.mxu0 %v3184_v60  ;;  %1931 = vmatprep.subr.bf16.mxu1 %v3186_v61 }
  0xc5   : > { %1637 = vmatmul.mubr.bf16.gmra.mxu0 %v3443_v41  ;;  %1750 = vmatmul.mubr.bf16.gmra.mxu1 %v3443_v41 }
  0xc6   : > { %1646 = vmatprep.mubr.bf16.mxu0 %v3315_v0  ;;  %1759 = vmatprep.mubr.bf16.mxu1 %v3315_v0 }
  0xc7   : > { %1819 = vmatpush1.bf16.msra.mxu0 %v3183_v3  ;;  %1932 = vmatpush1.bf16.msra.mxu1 %v3185_v4 }
  0xc8   : > { %1820 = vmatprep.subr.bf16.mxu0 %v3168_v5  ;;  %1933 = vmatprep.subr.bf16.mxu1 %v3170_v6 }
  0xcb   : > { %1821 = vmatpush1.bf16.msra.mxu0 %v3167_v12  ;;  %1934 = vmatpush1.bf16.msra.mxu1 %v3169_v14 }
  0xcc   : > { %1822 = vmatprep.subr.bf16.mxu0 %v3152_v18  ;;  %1935 = vmatprep.subr.bf16.mxu1 %v3154_v19 }
  0xcd   : > { %1647 = vmatmul.mubr.bf16.gmra.mxu0 %v3460_v58  ;;  %1760 = vmatmul.mubr.bf16.gmra.mxu1 %v3460_v58 }
  0xce   : > { %1656 = vmatprep.mubr.bf16.mxu0 %v3315_v0  ;;  %1769 = vmatprep.mubr.bf16.mxu1 %v3315_v0 }
  0xcf   : > { %1823 = vmatpush1.bf16.msra.mxu0 %v3151_v24  ;;  %1936 = vmatpush1.bf16.msra.mxu1 %v3153_v26 }
  0xd0   : > { %1824 = vmatprep.subr.bf16.mxu0 %v3136_v27  ;;  %1937 = vmatprep.subr.bf16.mxu1 %v3138_v28 }
  0xd3   : > { %1825 = vmatpush1.bf16.msra.mxu0 %v3135_v29  ;;  %1938 = vmatpush1.bf16.msra.mxu1 %v3137_v30 }
  0xd5   : > { %1657 = vmatmul.mubr.bf16.gmra.mxu0 %v3477_v13  ;;  %1770 = vmatmul.mubr.bf16.gmra.mxu1 %v3477_v13 }
  0xd6   : > { %1666 = vmatprep.mubr.bf16.mxu0 %v3315_v0  ;;  %1779 = vmatprep.mubr.bf16.mxu1 %v3315_v0 }
  0xdd   : > { %1667 = vmatmul.mubr.bf16.gmra.mxu0 %v3486_v15  ;;  %1780 = vmatmul.mubr.bf16.gmra.mxu1 %v3486_v15 }
  0xde   : > { %1676 = vmatprep.mubr.bf16.mxu0 %v3315_v0  ;;  %1789 = vmatprep.mubr.bf16.mxu1 %v3315_v0 }
  0xe5   : > { %1677 = vmatmul.mubr.bf16.gmra.mxu0 %v3495_v16  ;;  %1790 = vmatmul.mubr.bf16.gmra.mxu1 %v3495_v16 }
  0xe6   : > { %1686 = vmatprep.mubr.bf16.mxu0 %v3315_v0  ;;  %1799 = vmatprep.mubr.bf16.mxu1 %v3315_v0 }
  0xed   : > { %1687 = vmatmul.mubr.bf16.gmra.mxu0 %v3504_v17  ;;  %1800 = vmatmul.mubr.bf16.gmra.mxu1 %v3504_v17 }
  0xee   : > { %1842 = vmatprep.mubr.bf16.mxu0 %v3315_v0  ;;  %1955 = vmatprep.mubr.bf16.mxu1 %v3315_v0 }
  0xf5   : > { %v1166_v31 = vpop.f32.mrf.mxu0  ;;  %1843 = vmatmul.mubr.bf16.vlgmr.msra.gmra.mxu0 %v3409_v8  ;;  %v1279_v32 = vpop.f32.mrf.mxu1  ;;  %1956 = vmatmul.mubr.bf16.vlgmr.msra.gmra.mxu1 %v3409_v8 }
  0xf6   : > { %2933 = vst [vmem:[%s3641_s20] sm:$0xff] %v1166_v31  ;;  %1852 = vmatprep.mubr.bf16.mxu0 %v3315_v0  ;;  %2935 = vst [vmem:[%s3641_s20 + $0x10] sm:$0xff] %v1279_v32  ;;  %1965 = vmatprep.mubr.bf16.mxu1 %v3315_v0  ;;  %v2373_v34 = vmul.f32 %v1166_v31, %v1166_v31  ;;  %v2375_v35 = vmul.f32 %v1279_v32, %v1279_v32 }
  0xf7   : > { %v1168_v33 = vpop.f32.mrf.mxu0  ;;  %v1281_v38 = vpop.f32.mrf.mxu1 }
  0xf8   : > { %v2052_v36 = vadd.f32 %v1168_v33, %v1166_v31  ;;  %v2374_v37 = vmul.f32 %v1168_v33, %v1168_v33  ;;  %2934 = vst [vmem:[%s3641_s20 + $0x8] sm:$0xff] %v1168_v33  ;;  %2936 = vst [vmem:[%s3641_s20 + $0x18] sm:$0xff] %v1281_v38  ;;  %v2376_v44 = vmul.f32 %v1281_v38, %v1281_v38 }
  0xf9   : > { %v1170_v39 = vpop.f32.mrf.mxu0  ;;  %v1283_v43 = vpop.f32.mrf.mxu1 }
  0xfa   : > { %v2629_v40 = vadd.f32 %v2374_v37, %v2373_v34  ;;  %v2053_v42 = vadd.f32 %v2052_v36, %v1279_v32  ;;  %v2389_v45 = vmul.f32 %v1170_v39, %v1170_v39  ;;  %v2391_v53 = vmul.f32 %v1283_v43, %v1283_v43 }
  0xfb   : > { %v1172_v8 = vpop.f32.mrf.mxu0  ;;  %v1285_v50 = vpop.f32.mrf.mxu1 }
  0xfc   : > { %v3651_v46 = vadd.f32 %v2053_v42, %v1281_v38  ;;  %v2630_v47 = vadd.f32 %v2629_v40, %v2375_v35  ;;  %v2069_v48 = vadd.f32 %v1172_v8, %v1170_v39  ;;  %v2390_v49 = vmul.f32 %v1172_v8, %v1172_v8 }
  0xfd   : > { %v1176_v51 = vpop.f32.mrf.mxu0  ;;  %1853 = vmatmul.mubr.bf16.gmra.mxu0 %v3426_v25  ;;  %v1289_v56 = vpop.f32.mrf.mxu1  ;;  %1966 = vmatmul.mubr.bf16.gmra.mxu1 %v3426_v25  ;;  %v2392_v57 = vmul.f32 %v1285_v50, %v1285_v50 }
  0xfe   : > { %v3654_v52 = vadd.f32 %v2630_v47, %v2376_v44  ;;  %v2646_v54 = vadd.f32 %v2390_v49, %v2389_v45  ;;  %v2070_v55 = vadd.f32 %v2069_v48, %v1283_v43  ;;  %v2405_v59 = vmul.f32 %v1176_v51, %v1176_v51  ;;  %1862 = vmatprep.mubr.bf16.mxu0 %v3315_v0 }
  0xff   : > { %v2407_v60 = vmul.f32 %v1289_v56, %v1289_v56  ;;  %v1178_v61 = vpop.f32.mrf.mxu0  ;;  %1975 = vmatprep.mubr.bf16.mxu1 %v3315_v0  ;;  %v1291_v3 = vpop.f32.mrf.mxu1 }
 0x100   : > { %v3659_v62 = vadd.f32 %v2070_v55, %v1285_v50  ;;  %v2647_v63 = vadd.f32 %v2646_v54, %v2391_v53  ;;  %v2086_v1 = vadd.f32 %v1178_v61, %v1176_v51  ;;  %v2406_v2 = vmul.f32 %v1178_v61, %v1178_v61 }
 0x101   : > { %v1180_v4 = vpop.f32.mrf.mxu0  ;;  %v1293_v25 = vpop.f32.mrf.mxu1  ;;  %v2408_v9 = vmul.f32 %v1291_v3, %v1291_v3 }
 0x102   : > { %v3661_v5 = vadd.f32 %v2647_v63, %v2392_v57  ;;  %v2663_v6 = vadd.f32 %v2406_v2, %v2405_v59  ;;  %v2087_v7 = vadd.f32 %v2086_v1, %v1289_v56  ;;  %v2421_v10 = vmul.f32 %v1180_v4, %v1180_v4 }
 0x103   : > { %v1182_v11 = vpop.f32.mrf.mxu0  ;;  %v1295_v20 = vpop.f32.mrf.mxu1  ;;  %v2423_v23 = vmul.f32 %v1293_v25, %v1293_v25 }
 0x104   : > { %v3663_v12 = vadd.f32 %v2087_v7, %v1291_v3  ;;  %v2664_v14 = vadd.f32 %v2663_v6, %v2407_v60  ;;  %v2103_v18 = vadd.f32 %v1182_v11, %v1180_v4  ;;  %v2422_v19 = vmul.f32 %v1182_v11, %v1182_v11 }
 0x105   : > { %v1186_v21 = vpop.f32.mrf.mxu0  ;;  %1863 = vmatmul.mubr.bf16.gmra.mxu0 %v3443_v41  ;;  %v1299_v27 = vpop.f32.mrf.mxu1  ;;  %1976 = vmatmul.mubr.bf16.gmra.mxu1 %v3443_v41  ;;  %v2424_v28 = vmul.f32 %v1295_v20, %v1295_v20 }
 0x106   : > { %v3666_v22 = vadd.f32 %v2664_v14, %v2408_v9  ;;  %v2680_v24 = vadd.f32 %v2422_v19, %v2421_v10  ;;  %v2104_v26 = vadd.f32 %v2103_v18, %v1293_v25  ;;  %v2437_v29 = vmul.f32 %v1186_v21, %v1186_v21  ;;  %1872 = vmatprep.mubr.bf16.mxu0 %v3315_v0 }
 0x107   : > { %v2439_v30 = vmul.f32 %v1299_v27, %v1299_v27  ;;  %v1188_v31 = vpop.f32.mrf.mxu0  ;;  %1985 = vmatprep.mubr.bf16.mxu1 %v3315_v0  ;;  %v1301_v36 = vpop.f32.mrf.mxu1 }
 0x108   : > { %v3671_v32 = vadd.f32 %v2104_v26, %v1295_v20  ;;  %v2681_v33 = vadd.f32 %v2680_v24, %v2423_v23  ;;  %v2120_v34 = vadd.f32 %v1188_v31, %v1186_v21  ;;  %v2438_v35 = vmul.f32 %v1188_v31, %v1188_v31 }
 0x109   : > { %v1190_v37 = vpop.f32.mrf.mxu0  ;;  %v1303_v41 = vpop.f32.mrf.mxu1  ;;  %v2440_v42 = vmul.f32 %v1301_v36, %v1301_v36 }
 0x10a   : > { %v3673_v38 = vadd.f32 %v2681_v33, %v2424_v28  ;;  %v2697_v39 = vadd.f32 %v2438_v35, %v2437_v29  ;;  %v2121_v40 = vadd.f32 %v2120_v34, %v1299_v27  ;;  %v2453_v43 = vmul.f32 %v1190_v37, %v1190_v37 }
 0x10b   : > { %v1192_v44 = vpop.f32.mrf.mxu0  ;;  %v1305_v49 = vpop.f32.mrf.mxu1  ;;  %v2455_v53 = vmul.f32 %v1303_v41, %v1303_v41 }
 0x10c   : > { %v3675_v45 = vadd.f32 %v2121_v40, %v1301_v36  ;;  %v2698_v8 = vadd.f32 %v2697_v39, %v2439_v30  ;;  %v2137_v47 = vadd.f32 %v1192_v44, %v1190_v37  ;;  %v2454_v48 = vmul.f32 %v1192_v44, %v1192_v44 }
 0x10d   : > { %v1196_v50 = vpop.f32.mrf.mxu0  ;;  %1873 = vmatmul.mubr.bf16.gmra.mxu0 %v3460_v58  ;;  %v1309_v56 = vpop.f32.mrf.mxu1  ;;  %1986 = vmatmul.mubr.bf16.gmra.mxu1 %v3460_v58  ;;  %v2456_v57 = vmul.f32 %v1305_v49, %v1305_v49 }
 0x10e   : > { %v3678_v51 = vadd.f32 %v2698_v8, %v2440_v42  ;;  %v2714_v54 = vadd.f32 %v2454_v48, %v2453_v43  ;;  %v2138_v55 = vadd.f32 %v2137_v47, %v1303_v41  ;;  %v2469_v59 = vmul.f32 %v1196_v50, %v1196_v50  ;;  %1882 = vmatprep.mubr.bf16.mxu0 %v3315_v0 }
 0x10f   : > { %v2471_v60 = vmul.f32 %v1309_v56, %v1309_v56  ;;  %v1198_v61 = vpop.f32.mrf.mxu0  ;;  %1995 = vmatprep.mubr.bf16.mxu1 %v3315_v0  ;;  %v1311_v4 = vpop.f32.mrf.mxu1 }
 0x110   : > { %v3683_v63 = vadd.f32 %v2138_v55, %v1305_v49  ;;  %v2715_v1 = vadd.f32 %v2714_v54, %v2455_v53  ;;  %v2154_v2 = vadd.f32 %v1198_v61, %v1196_v50  ;;  %v2470_v3 = vmul.f32 %v1198_v61, %v1198_v61 }
 0x111   : > { %v1200_v6 = vpop.f32.mrf.mxu0  ;;  %v1313_v58 = vpop.f32.mrf.mxu1  ;;  %v2472_v10 = vmul.f32 %v1311_v4, %v1311_v4 }
 0x112   : > { %v3685_v7 = vadd.f32 %v2715_v1, %v2456_v57  ;;  %v2731_v25 = vadd.f32 %v2470_v3, %v2469_v59  ;;  %v2155_v9 = vadd.f32 %v2154_v2, %v1309_v56  ;;  %v2485_v11 = vmul.f32 %v1200_v6, %v1200_v6 }
 0x113   : > { %v1202_v14 = vpop.f32.mrf.mxu0  ;;  %v1315_v23 = vpop.f32.mrf.mxu1  ;;  %v2487_v27 = vmul.f32 %v1313_v58, %v1313_v58 }
 0x114   : > { %v3687_v18 = vadd.f32 %v2155_v9, %v1311_v4  ;;  %v2732_v19 = vadd.f32 %v2731_v25, %v2471_v60  ;;  %v2171_v20 = vadd.f32 %v1202_v14, %v1200_v6  ;;  %v2486_v21 = vmul.f32 %v1202_v14, %v1202_v14 }
 0x115   : > { %v1206_v24 = vpop.f32.mrf.mxu0  ;;  %1883 = vmatmul.mubr.bf16.gmra.mxu0 %v3477_v13  ;;  %v1319_v30 = vpop.f32.mrf.mxu1  ;;  %1996 = vmatmul.mubr.bf16.gmra.mxu1 %v3477_v13  ;;  %v2488_v31 = vmul.f32 %v1315_v23, %v1315_v23 }
 0x116   : > { %v3690_v26 = vadd.f32 %v2732_v19, %v2472_v10  ;;  %v2748_v28 = vadd.f32 %v2486_v21, %v2485_v11  ;;  %v2172_v29 = vadd.f32 %v2171_v20, %v1313_v58  ;;  %v2501_v33 = vmul.f32 %v1206_v24, %v1206_v24  ;;  %1892 = vmatprep.mubr.bf16.mxu0 %v3315_v0 }
 0x117   : > { %v2503_v34 = vmul.f32 %v1319_v30, %v1319_v30  ;;  %v1208_v35 = vpop.f32.mrf.mxu0  ;;  %2005 = vmatprep.mubr.bf16.mxu1 %v3315_v0  ;;  %v1321_v41 = vpop.f32.mrf.mxu1 }
 0x118   : > { %v3695_v36 = vadd.f32 %v2172_v29, %v1315_v23  ;;  %v2749_v37 = vadd.f32 %v2748_v28, %v2487_v27  ;;  %v2188_v39 = vadd.f32 %v1208_v35, %v1206_v24  ;;  %v2502_v40 = vmul.f32 %v1208_v35, %v1208_v35 }
 0x119   : > { %v1210_v42 = vpop.f32.mrf.mxu0  ;;  %v1323_v13 = vpop.f32.mrf.mxu1  ;;  %v2504_v47 = vmul.f32 %v1321_v41, %v1321_v41 }
 0x11a   : > { %v3697_v43 = vadd.f32 %v2749_v37, %v2488_v31  ;;  %v2765_v44 = vadd.f32 %v2502_v40, %v2501_v33  ;;  %v2189_v8 = vadd.f32 %v2188_v39, %v1319_v30  ;;  %v2517_v48 = vmul.f32 %v1210_v42, %v1210_v42 }
 0x11b   : > { %v1212_v49 = vpop.f32.mrf.mxu0  ;;  %v1325_v56 = vpop.f32.mrf.mxu1  ;;  %v2519_v60 = vmul.f32 %v1323_v13, %v1323_v13 }
 0x11c   : > { %v3699_v50 = vadd.f32 %v2189_v8, %v1321_v41  ;;  %v2766_v53 = vadd.f32 %v2765_v44, %v2503_v34  ;;  %v2205_v54 = vadd.f32 %v1212_v49, %v1210_v42  ;;  %v2518_v55 = vmul.f32 %v1212_v49, %v1212_v49 }
 0x11d   : > { %v1216_v57 = vpop.f32.mrf.mxu0  ;;  %1893 = vmatmul.mubr.bf16.gmra.mxu0 %v3486_v15  ;;  %v1329_v2 = vpop.f32.mrf.mxu1  ;;  %2006 = vmatmul.mubr.bf16.gmra.mxu1 %v3486_v15  ;;  %v2520_v3 = vmul.f32 %v1325_v56, %v1325_v56 }
 0x11e   : > { %v3702_v59 = vadd.f32 %v2766_v53, %v2504_v47  ;;  %v2782_v61 = vadd.f32 %v2518_v55, %v2517_v48  ;;  %v2206_v1 = vadd.f32 %v2205_v54, %v1323_v13  ;;  %v2533_v4 = vmul.f32 %v1216_v57, %v1216_v57  ;;  %1902 = vmatprep.mubr.bf16.mxu0 %v3315_v0 }
 0x11f   : > { %v2535_v6 = vmul.f32 %v1329_v2, %v1329_v2  ;;  %v1218_v25 = vpop.f32.mrf.mxu0  ;;  %2015 = vmatprep.mubr.bf16.mxu1 %v3315_v0  ;;  %v1331_v14 = vpop.f32.mrf.mxu1 }
 0x120   : > { %v3707_v9 = vadd.f32 %v2206_v1, %v1325_v56  ;;  %v2783_v58 = vadd.f32 %v2782_v61, %v2519_v60  ;;  %v2222_v10 = vadd.f32 %v1218_v25, %v1216_v57  ;;  %v2534_v11 = vmul.f32 %v1218_v25, %v1218_v25 }
 0x121   : > { %v1220_v19 = vpop.f32.mrf.mxu0  ;;  %v1333_v15 = vpop.f32.mrf.mxu1  ;;  %v2536_v24 = vmul.f32 %v1331_v14, %v1331_v14 }
 0x122   : > { %v3709_v20 = vadd.f32 %v2783_v58, %v2520_v3  ;;  %v2799_v21 = vadd.f32 %v2534_v11, %v2533_v4  ;;  %v2223_v23 = vadd.f32 %v2222_v10, %v1329_v2  ;;  %v2549_v27 = vmul.f32 %v1220_v19, %v1220_v19 }
 0x123   : > { %v1222_v28 = vpop.f32.mrf.mxu0  ;;  %v1335_v34 = vpop.f32.mrf.mxu1  ;;  %v2551_v39 = vmul.f32 %v1333_v15, %v1333_v15 }
 0x124   : > { %v3711_v29 = vadd.f32 %v2223_v23, %v1331_v14  ;;  %v2800_v30 = vadd.f32 %v2799_v21, %v2535_v6  ;;  %v2239_v31 = vadd.f32 %v1222_v28, %v1220_v19  ;;  %v2550_v33 = vmul.f32 %v1222_v28, %v1222_v28 }
 0x125   : > { %v1226_v35 = vpop.f32.mrf.mxu0  ;;  %1903 = vmatmul.mubr.bf16.gmra.mxu0 %v3495_v16  ;;  %v1339_v42 = vpop.f32.mrf.mxu1  ;;  %2016 = vmatmul.mubr.bf16.gmra.mxu1 %v3495_v16  ;;  %v2552_v44 = vmul.f32 %v1335_v34, %v1335_v34 }
 0x126   : > { %v3714_v37 = vadd.f32 %v2800_v30, %v2536_v24  ;;  %v2816_v40 = vadd.f32 %v2550_v33, %v2549_v27  ;;  %v2240_v41 = vadd.f32 %v2239_v31, %v1333_v15  ;;  %v2565_v8 = vmul.f32 %v1226_v35, %v1226_v35  ;;  %1912 = vmatprep.mubr.bf16.mxu0 %v3315_v0 }
 0x127   : > { %v2567_v13 = vmul.f32 %v1339_v42, %v1339_v42  ;;  %v1228_v47 = vpop.f32.mrf.mxu0  ;;  %2025 = vmatprep.mubr.bf16.mxu1 %v3315_v0  ;;  %v1341_v55 = vpop.f32.mrf.mxu1 }
 0x128   : > { %v3719_v48 = vadd.f32 %v2240_v41, %v1335_v34  ;;  %v2817_v49 = vadd.f32 %v2816_v40, %v2551_v39  ;;  %v2256_v53 = vadd.f32 %v1228_v47, %v1226_v35  ;;  %v2566_v54 = vmul.f32 %v1228_v47, %v1228_v47 }
 0x129   : > { %v1230_v56 = vpop.f32.mrf.mxu0  ;;  %v1343_v16 = vpop.f32.mrf.mxu1  ;;  %v2568_v1 = vmul.f32 %v1341_v55, %v1341_v55 }
 0x12a   : > { %v3721_v57 = vadd.f32 %v2817_v49, %v2552_v44  ;;  %v2833_v60 = vadd.f32 %v2566_v54, %v2565_v8  ;;  %v2257_v61 = vadd.f32 %v2256_v53, %v1339_v42  ;;  %v2581_v2 = vmul.f32 %v1230_v56, %v1230_v56 }
 0x12b   : > { %v1232_v3 = vpop.f32.mrf.mxu0  ;;  %v1345_v58 = vpop.f32.mrf.mxu1  ;;  %v2583_v14 = vmul.f32 %v1343_v16, %v1343_v16 }
 0x12c   : > { %v3723_v4 = vadd.f32 %v2257_v61, %v1341_v55  ;;  %v2834_v6 = vadd.f32 %v2833_v60, %v2567_v13  ;;  %v2273_v25 = vadd.f32 %v1232_v3, %v1230_v56  ;;  %v2582_v0 = vmul.f32 %v1232_v3, %v1232_v3 }
 0x12d   : > { %v1236_v10 = vpop.f32.mrf.mxu0  ;;  %1913 = vmatmul.mubr.bf16.gmra.mxu0 %v3504_v17  ;;  %v1349_v23 = vpop.f32.mrf.mxu1  ;;  %2026 = vmatmul.mubr.bf16.gmra.mxu1 %v3504_v17  ;;  %v2584_v15 = vmul.f32 %v1345_v58, %v1345_v58 }
 0x12e   : > { %v3726_v11 = vadd.f32 %v2834_v6, %v2568_v1  ;;  %v2850_v19 = vadd.f32 %v2582_v0, %v2581_v2  ;;  %v2274_v21 = vadd.f32 %v2273_v25, %v1343_v16  ;;  %v2597_v24 = vmul.f32 %v1236_v10, %v1236_v10 }
 0x12f   : > { %v2599_v27 = vmul.f32 %v1349_v23, %v1349_v23  ;;  %v1238_v28 = vpop.f32.mrf.mxu0  ;;  %v1351_v35 = vpop.f32.mrf.mxu1 }
 0x130   : > { %v3729_v30 = vadd.f32 %v2274_v21, %v1345_v58  ;;  %v2851_v31 = vadd.f32 %v2850_v19, %v2583_v14  ;;  %v2290_v33 = vadd.f32 %v1238_v28, %v1236_v10  ;;  %v2598_v34 = vmul.f32 %v1238_v28, %v1238_v28 }
 0x131   : > { %v1240_v39 = vpop.f32.mrf.mxu0  ;;  %v1353_v44 = vpop.f32.mrf.mxu1  ;;  %v2600_v8 = vmul.f32 %v1351_v35, %v1351_v35 }
 0x132   : > { %v3731_v40 = vadd.f32 %v2851_v31, %v2584_v15  ;;  %v2867_v41 = vadd.f32 %v2598_v34, %v2597_v24  ;;  %v2291_v42 = vadd.f32 %v2290_v33, %v1349_v23  ;;  %v2613_v13 = vmul.f32 %v1240_v39, %v1240_v39 }
 0x133   : > { %v1242_v17 = vpop.f32.mrf.mxu0  ;;  %v1355_v55 = vpop.f32.mrf.mxu1  ;;  %v2615_v56 = vmul.f32 %v1353_v44, %v1353_v44 }
 0x134   : > { %v3733_v47 = vadd.f32 %v2291_v42, %v1351_v35  ;;  %v2868_v49 = vadd.f32 %v2867_v41, %v2599_v27  ;;  %v2307_v53 = vadd.f32 %v1242_v17, %v1240_v39  ;;  %v2614_v54 = vmul.f32 %v1242_v17, %v1242_v17 }
 0x135   : > { %v1392_v60 = vpop.f32.mrf.mxu0  ;;  %v1505_v3 = vpop.f32.mrf.mxu1  ;;  %v2616_v6 = vmul.f32 %v1355_v55, %v1355_v55 }
 0x136   : > { %v3735_v61 = vadd.f32 %v2868_v49, %v2600_v8  ;;  %v2884_v16 = vadd.f32 %v2614_v54, %v2613_v13  ;;  %v2308_v1 = vadd.f32 %v2307_v53, %v1353_v44  ;;  %v2055_v2 = vadd.f32 %v3651_v46, %v1392_v60  ;;  %2937 = vst [vmem:[%s3641_s20 + $0x20] sm:$0xff] %v1392_v60 }
 0x137   : > { %v2377_v25 = vmul.f32 %v1392_v60, %v1392_v60  ;;  %2939 = vst [vmem:[%s3641_s20 + $0x30] sm:$0xff] %v1505_v3  ;;  %v1394_v0 = vpop.f32.mrf.mxu0  ;;  %v1507_v21 = vpop.f32.mrf.mxu1  ;;  %v2379_v15 = vmul.f32 %v1505_v3, %v1505_v3 }
 0x138   : > { %v3740_v58 = vadd.f32 %v2308_v1, %v1355_v55  ;;  %v2885_v10 = vadd.f32 %v2884_v16, %v2615_v56  ;;  %v2056_v14 = vadd.f32 %v2055_v2, %v1394_v0  ;;  %v2378_v19 = vmul.f32 %v1394_v0, %v1394_v0  ;;  %2938 = vst [vmem:[%s3641_s20 + $0x28] sm:$0xff] %v1394_v0 }
 0x139   : > { %v2632_v23 = vadd.f32 %v3654_v52, %v2377_v25  ;;  %2940 = vst [vmem:[%s3641_s20 + $0x38] sm:$0xff] %v1507_v21  ;;  %v1396_v24 = vpop.f32.mrf.mxu0  ;;  %v1509_v33 = vpop.f32.mrf.mxu1  ;;  %v2380_v52 = vmul.f32 %v1507_v21, %v1507_v21 }
 0x13a   : > { %v3745_v27 = vadd.f32 %v2885_v10, %v2616_v6  ;;  %v2057_v46 = vadd.f32 %v2056_v14, %v1505_v3  ;;  %v2072_v28 = vadd.f32 %v3659_v62, %v1396_v24  ;;  %v2393_v31 = vmul.f32 %v1396_v24, %v1396_v24 }
 0x13b   : > { %v2633_v34 = vadd.f32 %v2632_v23, %v2378_v19  ;;  %v1398_v35 = vpop.f32.mrf.mxu0  ;;  %v1511_v8 = vpop.f32.mrf.mxu1  ;;  %v2395_v17 = vmul.f32 %v1509_v33, %v1509_v33 }
 0x13c   : > { %v3748_v39 = vadd.f32 %v2057_v46, %v1507_v21  ;;  %v2649_v41 = vadd.f32 %v3661_v5, %v2393_v31  ;;  %v2073_v42 = vadd.f32 %v2072_v28, %v1398_v35  ;;  %v2394_v44 = vmul.f32 %v1398_v35, %v1398_v35 }
 0x13d   : > { %v2634_v13 = vadd.f32 %v2633_v34, %v2379_v15  ;;  %v1402_v49 = vpop.f32.mrf.mxu0  ;;  %v1515_v56 = vpop.f32.mrf.mxu1  ;;  %v2396_v16 = vmul.f32 %v1511_v8, %v1511_v8 }
 0x13e   : > { %v2650_v53 = vadd.f32 %v2649_v41, %v2394_v44  ;;  %v2074_v54 = vadd.f32 %v2073_v42, %v1509_v33  ;;  %v2089_v55 = vadd.f32 %v3663_v12, %v1402_v49  ;;  %v2409_v62 = vmul.f32 %v1402_v49, %v1402_v49 }
 0x13f   : > { %v3752_v60 = vadd.f32 %v2634_v13, %v2380_v52  ;;  %v1404_v1 = vpop.f32.mrf.mxu0  ;;  %v1517_v25 = vpop.f32.mrf.mxu1  ;;  %v2411_v0 = vmul.f32 %v1515_v56, %v1515_v56 }
 0x140   : > { %v3754_v2 = vadd.f32 %v2074_v54, %v1511_v8  ;;  %v2651_v5 = vadd.f32 %v2650_v53, %v2395_v17  ;;  %v2666_v3 = vadd.f32 %v3666_v22, %v2409_v62  ;;  %v2090_v6 = vadd.f32 %v2089_v55, %v1404_v1 }
 0x141   : > { %v2410_v10 = vmul.f32 %v1404_v1, %v1404_v1  ;;  %v1406_v14 = vpop.f32.mrf.mxu0  ;;  %v1519_v15 = vpop.f32.mrf.mxu1  ;;  %v2412_v35 = vmul.f32 %v1517_v25, %v1517_v25 }
 0x142   : > { %v3757_v19 = vadd.f32 %v2651_v5, %v2396_v16  ;;  %v2091_v21 = vadd.f32 %v2090_v6, %v1515_v56  ;;  %v2106_v12 = vadd.f32 %v3671_v32, %v1406_v14  ;;  %v2425_v23 = vmul.f32 %v1406_v14, %v1406_v14 }
 0x143   : > { %v2667_v24 = vadd.f32 %v2666_v3, %v2410_v10  ;;  %v1408_v46 = vpop.f32.mrf.mxu0  ;;  %v1521_v34 = vpop.f32.mrf.mxu1  ;;  %v2427_v42 = vmul.f32 %v1519_v15, %v1519_v15 }
 0x144   : > { %v3760_v28 = vadd.f32 %v2091_v21, %v1517_v25  ;;  %v2683_v31 = vadd.f32 %v3673_v38, %v2425_v23  ;;  %v2107_v33 = vadd.f32 %v2106_v12, %v1408_v46  ;;  %v2426_v22 = vmul.f32 %v1408_v46, %v1408_v46 }
 0x145   : > { %v2668_v41 = vadd.f32 %v2667_v24, %v2411_v0  ;;  %v1412_v44 = vpop.f32.mrf.mxu0  ;;  %v1525_v17 = vpop.f32.mrf.mxu1  ;;  %v2428_v53 = vmul.f32 %v1521_v34, %v1521_v34 }
 0x146   : > { %v2684_v8 = vadd.f32 %v2683_v31, %v2426_v22  ;;  %v2108_v52 = vadd.f32 %v2107_v33, %v1519_v15  ;;  %v2123_v13 = vadd.f32 %v3675_v45, %v1412_v44  ;;  %v2441_v32 = vmul.f32 %v1412_v44, %v1412_v44 }
 0x147   : > { %v3764_v49 = vadd.f32 %v2668_v41, %v2412_v35  ;;  %v1414_v54 = vpop.f32.mrf.mxu0  ;;  %v1527_v16 = vpop.f32.mrf.mxu1  ;;  %v2443_v1 = vmul.f32 %v1525_v17, %v1525_v17 }
 0x148   : > { %v3766_v55 = vadd.f32 %v2108_v52, %v1521_v34  ;;  %v2685_v38 = vadd.f32 %v2684_v8, %v2427_v42  ;;  %v2700_v62 = vadd.f32 %v3678_v51, %v2441_v32  ;;  %v2124_v56 = vadd.f32 %v2123_v13, %v1414_v54 }
 0x149   : > { %v2442_v5 = vmul.f32 %v1414_v54, %v1414_v54  ;;  %v1416_v3 = vpop.f32.mrf.mxu0  ;;  %v1529_v10 = vpop.f32.mrf.mxu1  ;;  %v2444_v46 = vmul.f32 %v1527_v16, %v1527_v16 }
 0x14a   : > { %v3769_v6 = vadd.f32 %v2685_v38, %v2428_v53  ;;  %v2125_v25 = vadd.f32 %v2124_v56, %v1525_v17  ;;  %v2140_v45 = vadd.f32 %v3683_v63, %v1416_v3  ;;  %v2457_v0 = vmul.f32 %v1416_v3, %v1416_v3 }
 0x14b   : > { %v2701_v14 = vadd.f32 %v2700_v62, %v2442_v5  ;;  %v1418_v21 = vpop.f32.mrf.mxu0  ;;  %v1531_v24 = vpop.f32.mrf.mxu1  ;;  %v2459_v33 = vmul.f32 %v1529_v10, %v1529_v10 }
 0x14c   : > { %v3772_v12 = vadd.f32 %v2125_v25, %v1527_v16  ;;  %v2717_v23 = vadd.f32 %v3685_v7, %v2457_v0  ;;  %v2141_v15 = vadd.f32 %v2140_v45, %v1418_v21  ;;  %v2458_v51 = vmul.f32 %v1418_v21, %v1418_v21 }
 0x14d   : > { %v2702_v31 = vadd.f32 %v2701_v14, %v2443_v1  ;;  %v1422_v22 = vpop.f32.mrf.mxu0  ;;  %v1535_v42 = vpop.f32.mrf.mxu1  ;;  %v2460_v8 = vmul.f32 %v1531_v24, %v1531_v24 }
 0x14e   : > { %v2718_v34 = vadd.f32 %v2717_v23, %v2458_v51  ;;  %v2142_v35 = vadd.f32 %v2141_v15, %v1529_v10  ;;  %v2157_v41 = vadd.f32 %v3687_v18, %v1422_v22  ;;  %v2473_v63 = vmul.f32 %v1422_v22, %v1422_v22 }
 0x14f   : > { %v3776_v44 = vadd.f32 %v2702_v31, %v2444_v46  ;;  %v1424_v52 = vpop.f32.mrf.mxu0  ;;  %v1537_v53 = vpop.f32.mrf.mxu1  ;;  %v2475_v54 = vmul.f32 %v1535_v42, %v1535_v42 }
 0x150   : > { %v3778_v13 = vadd.f32 %v2142_v35, %v1531_v24  ;;  %v2719_v7 = vadd.f32 %v2718_v34, %v2459_v33  ;;  %v2734_v32 = vadd.f32 %v3690_v26, %v2473_v63  ;;  %v2158_v17 = vadd.f32 %v2157_v41, %v1424_v52 }
 0x151   : > { %v2474_v38 = vmul.f32 %v1424_v52, %v1424_v52  ;;  %v1426_v62 = vpop.f32.mrf.mxu0  ;;  %v1539_v5 = vpop.f32.mrf.mxu1  ;;  %v2476_v21 = vmul.f32 %v1537_v53, %v1537_v53 }
 0x152   : > { %v3781_v56 = vadd.f32 %v2719_v7, %v2460_v8  ;;  %v2159_v16 = vadd.f32 %v2158_v17, %v1535_v42  ;;  %v2174_v18 = vadd.f32 %v3695_v36, %v1426_v62  ;;  %v2489_v1 = vmul.f32 %v1426_v62, %v1426_v62 }
 0x153   : > { %v2735_v3 = vadd.f32 %v2734_v32, %v2474_v38  ;;  %v1428_v25 = vpop.f32.mrf.mxu0  ;;  %v1541_v14 = vpop.f32.mrf.mxu1  ;;  %v2491_v15 = vmul.f32 %v1539_v5, %v1539_v5 }
 0x154   : > { %v3784_v45 = vadd.f32 %v2159_v16, %v1537_v53  ;;  %v2751_v0 = vadd.f32 %v3697_v43, %v2489_v1  ;;  %v2175_v10 = vadd.f32 %v2174_v18, %v1428_v25  ;;  %v2490_v26 = vmul.f32 %v1428_v25, %v1428_v25 }
 0x155   : > { %v2736_v23 = vadd.f32 %v2735_v3, %v2475_v54  ;;  %v1432_v51 = vpop.f32.mrf.mxu0  ;;  %v1545_v33 = vpop.f32.mrf.mxu1  ;;  %v2492_v34 = vmul.f32 %v1541_v14, %v1541_v14 }
 0x156   : > { %v2752_v24 = vadd.f32 %v2751_v0, %v2490_v26  ;;  %v2176_v46 = vadd.f32 %v2175_v10, %v1539_v5  ;;  %v2191_v31 = vadd.f32 %v3699_v50, %v1432_v51  ;;  %v2505_v36 = vmul.f32 %v1432_v51, %v1432_v51 }
 0x157   : > { %v3788_v22 = vadd.f32 %v2736_v23, %v2476_v21  ;;  %v1434_v35 = vpop.f32.mrf.mxu0  ;;  %v1547_v8 = vpop.f32.mrf.mxu1  ;;  %v2507_v52 = vmul.f32 %v1545_v33, %v1545_v33 }
 0x158   : > { %v3790_v41 = vadd.f32 %v2176_v46, %v1541_v14  ;;  %v2753_v43 = vadd.f32 %v2752_v24, %v2491_v15  ;;  %v2768_v63 = vadd.f32 %v3702_v59, %v2505_v36  ;;  %v2192_v42 = vadd.f32 %v2191_v31, %v1434_v35 }
 0x159   : > { %v2506_v7 = vmul.f32 %v1434_v35, %v1434_v35  ;;  %v1436_v32 = vpop.f32.mrf.mxu0  ;;  %v1549_v38 = vpop.f32.mrf.mxu1  ;;  %v2508_v25 = vmul.f32 %v1547_v8, %v1547_v8 }
 0x15a   : > { %v3793_v17 = vadd.f32 %v2753_v43, %v2492_v34  ;;  %v2193_v53 = vadd.f32 %v2192_v42, %v1545_v33  ;;  %v2208_v50 = vadd.f32 %v3707_v9, %v1436_v32  ;;  %v2521_v54 = vmul.f32 %v1436_v32, %v1436_v32 }
 0x15b   : > { %v2769_v62 = vadd.f32 %v2768_v63, %v2506_v7  ;;  %v1438_v16 = vpop.f32.mrf.mxu0  ;;  %v1551_v3 = vpop.f32.mrf.mxu1  ;;  %v2523_v10 = vmul.f32 %v1549_v38, %v1549_v38 }
 0x15c   : > { %v3796_v18 = vadd.f32 %v2193_v53, %v1547_v8  ;;  %v2785_v1 = vadd.f32 %v3709_v20, %v2521_v54  ;;  %v2209_v5 = vadd.f32 %v2208_v50, %v1438_v16  ;;  %v2522_v59 = vmul.f32 %v1438_v16, %v1438_v16 }
 0x15d   : > { %v2770_v0 = vadd.f32 %v2769_v62, %v2507_v52  ;;  %v1442_v26 = vpop.f32.mrf.mxu0  ;;  %v1555_v15 = vpop.f32.mrf.mxu1  ;;  %v2524_v24 = vmul.f32 %v1551_v3, %v1551_v3 }
 0x15e   : > { %v2786_v14 = vadd.f32 %v2785_v1, %v2522_v59  ;;  %v2210_v21 = vadd.f32 %v2209_v5, %v1549_v38  ;;  %v2225_v23 = vadd.f32 %v3711_v29, %v1442_v26  ;;  %v2537_v9 = vmul.f32 %v1442_v26, %v1442_v26 }
 0x15f   : > { %v3800_v51 = vadd.f32 %v2770_v0, %v2508_v25  ;;  %v1444_v46 = vpop.f32.mrf.mxu0  ;;  %v1557_v34 = vpop.f32.mrf.mxu1  ;;  %v2539_v35 = vmul.f32 %v1555_v15, %v1555_v15 }
 0x160   : > { %v3802_v31 = vadd.f32 %v2210_v21, %v1551_v3  ;;  %v2787_v20 = vadd.f32 %v2786_v14, %v2523_v10  ;;  %v2802_v36 = vadd.f32 %v3714_v37, %v2537_v9  ;;  %v2226_v33 = vadd.f32 %v2225_v23, %v1444_v46 }
 0x161   : > { %v2538_v43 = vmul.f32 %v1444_v46, %v1444_v46  ;;  %v1446_v63 = vpop.f32.mrf.mxu0  ;;  %v1559_v7 = vpop.f32.mrf.mxu1  ;;  %v2540_v16 = vmul.f32 %v1557_v34, %v1557_v34 }
 0x162   : > { %v3805_v42 = vadd.f32 %v2787_v20, %v2524_v24  ;;  %v2227_v8 = vadd.f32 %v2226_v33, %v1555_v15  ;;  %v2242_v29 = vadd.f32 %v3719_v48, %v1446_v63  ;;  %v2553_v52 = vmul.f32 %v1446_v63, %v1446_v63 }
 0x163   : > { %v2803_v32 = vadd.f32 %v2802_v36, %v2538_v43  ;;  %v1448_v53 = vpop.f32.mrf.mxu0  ;;  %v1561_v62 = vpop.f32.mrf.mxu1  ;;  %v2555_v5 = vmul.f32 %v1559_v7, %v1559_v7 }
 0x164   : > { %v3808_v50 = vadd.f32 %v2227_v8, %v1557_v34  ;;  %v2819_v54 = vadd.f32 %v3721_v57, %v2553_v52  ;;  %v2243_v38 = vadd.f32 %v2242_v29, %v1448_v53  ;;  %v2554_v37 = vmul.f32 %v1448_v53, %v1448_v53 }
 0x165   : > { %v2804_v1 = vadd.f32 %v2803_v32, %v2539_v35  ;;  %v1452_v59 = vpop.f32.mrf.mxu0  ;;  %v1565_v10 = vpop.f32.mrf.mxu1  ;;  %v2556_v14 = vmul.f32 %v1561_v62, %v1561_v62 }
 0x166   : > { %4511 = vst [vmem:[#allocation2_spill] sm:$0xff] %v3808_v50  ;;  %v2820_v3 = vadd.f32 %v2819_v54, %v2554_v37  ;;  %v2244_v25 = vadd.f32 %v2243_v38, %v1559_v7  ;;  %v2259_v0 = vadd.f32 %v3723_v4, %v1452_v59  ;;  %v2569_v48 = vmul.f32 %v1452_v59, %v1452_v59 }
 0x167   : > { %v3812_v26 = vadd.f32 %v2804_v1, %v2540_v16  ;;  %v1454_v21 = vpop.f32.mrf.mxu0  ;;  %v1567_v24 = vpop.f32.mrf.mxu1  ;;  %v2571_v46 = vmul.f32 %v1565_v10, %v1565_v10 }
 0x168   : > { %v3814_v23 = vadd.f32 %v2244_v25, %v1561_v62  ;;  %v2821_v57 = vadd.f32 %v2820_v3, %v2555_v5  ;;  %v2836_v9 = vadd.f32 %v3726_v11, %v2569_v48  ;;  %v2260_v15 = vadd.f32 %v2259_v0, %v1454_v21 }
 0x169   : > { %4512 = vst [vmem:[#allocation3_spill] sm:$0xff] %v3812_v26  ;;  %v2570_v20 = vmul.f32 %v1454_v21, %v1454_v21  ;;  %v1456_v36 = vpop.f32.mrf.mxu0  ;;  %v1569_v43 = vpop.f32.mrf.mxu1  ;;  %v2572_v53 = vmul.f32 %v1567_v24, %v1567_v24 }
 0x16a   : > { %4513 = vst [vmem:[#allocation4_spill] sm:$0xff] %v3814_v23  ;;  %v3817_v33 = vadd.f32 %v2821_v57, %v2556_v14  ;;  %v2261_v34 = vadd.f32 %v2260_v15, %v1565_v10  ;;  %v2276_v4 = vadd.f32 %v3729_v30, %v1456_v36  ;;  %v2585_v35 = vmul.f32 %v1456_v36, %v1456_v36 }
 0x16b   : > { %v2837_v63 = vadd.f32 %v2836_v9, %v2570_v20  ;;  %v1458_v8 = vpop.f32.mrf.mxu0  ;;  %v1571_v32 = vpop.f32.mrf.mxu1  ;;  %v2587_v38 = vmul.f32 %v1569_v43, %v1569_v43 }
 0x16c   : > { %4514 = vst [vmem:[#allocation5_spill] sm:$0xff] %v3817_v33  ;;  %v3820_v29 = vadd.f32 %v2261_v34, %v1567_v24  ;;  %v2853_v52 = vadd.f32 %v3731_v40, %v2585_v35  ;;  %v2277_v7 = vadd.f32 %v2276_v4, %v1458_v8  ;;  %v2586_v11 = vmul.f32 %v1458_v8, %v1458_v8 }
 0x16d   : > { %v2838_v54 = vadd.f32 %v2837_v63, %v2571_v46  ;;  %v1462_v37 = vpop.f32.mrf.mxu0  ;;  %v1575_v5 = vpop.f32.mrf.mxu1  ;;  %v2588_v3 = vmul.f32 %v1571_v32, %v1571_v32 }
 0x16e   : > { %4515 = vst [vmem:[#allocation6_spill] sm:$0xff] %v3820_v29  ;;  %v2854_v62 = vadd.f32 %v2853_v52, %v2586_v11  ;;  %v2278_v16 = vadd.f32 %v2277_v7, %v1569_v43  ;;  %v2293_v1 = vadd.f32 %v3733_v47, %v1462_v37  ;;  %v2601_v30 = vmul.f32 %v1462_v37, %v1462_v37 }
 0x16f   : > { %v3824_v59 = vadd.f32 %v2838_v54, %v2572_v53  ;;  %v1464_v25 = vpop.f32.mrf.mxu0  ;;  %v1577_v14 = vpop.f32.mrf.mxu1  ;;  %v2603_v21 = vmul.f32 %v1575_v5, %v1575_v5 }
 0x170   : > { %v3826_v0 = vadd.f32 %v2278_v16, %v1571_v32  ;;  %v2855_v40 = vadd.f32 %v2854_v62, %v2587_v38  ;;  %v2870_v48 = vadd.f32 %v3735_v61, %v2601_v30  ;;  %v2294_v10 = vadd.f32 %v2293_v1, %v1464_v25 }
 0x171   : > { %4516 = vst [vmem:[#allocation7_spill] sm:$0xff] %v3824_v59  ;;  %v2602_v57 = vmul.f32 %v1464_v25, %v1464_v25  ;;  %v1466_v9 = vpop.f32.mrf.mxu0  ;;  %v1579_v20 = vpop.f32.mrf.mxu1  ;;  %v2604_v8 = vmul.f32 %v1577_v14, %v1577_v14 }
 0x172   : > { %4517 = vst [vmem:[#allocation8_spill] sm:$0xff] %v3826_v0  ;;  %v3829_v15 = vadd.f32 %v2855_v40, %v2588_v3  ;;  %v2295_v24 = vadd.f32 %v2294_v10, %v1575_v5  ;;  %v2310_v47 = vadd.f32 %v3740_v58, %v1466_v9  ;;  %v2617_v46 = vmul.f32 %v1466_v9, %v1466_v9 }
 0x173   : > { %v2871_v36 = vadd.f32 %v2870_v48, %v2602_v57  ;;  %v1468_v34 = vpop.f32.mrf.mxu0  ;;  %v1581_v63 = vpop.f32.mrf.mxu1  ;;  %v2619_v58 = vmul.f32 %v1579_v20, %v1579_v20  ;;  %v4501_v9 = vmov 0.0  }
 0x174   : > { %4518 = vst [vmem:[#allocation9_spill] sm:$0xff] %v3829_v15  ;;  %v3832_v4 = vadd.f32 %v2295_v24, %v1577_v14  ;;  %v2887_v61 = vadd.f32 %v3745_v27, %v2617_v46  ;;  %v2311_v35 = vadd.f32 %v2310_v47, %v1468_v34  ;;  %v2618_v43 = vmul.f32 %v1468_v34, %v1468_v34 }
 0x175   : > { %v2872_v52 = vadd.f32 %v2871_v36, %v2603_v21  ;;  %v3835_v7 = vpop.f32.mrf.mxu0  ;;  %v3839_v53 = vpop.f32.mrf.mxu1  ;;  %v2620_v37 = vmul.f32 %v1581_v63, %v1581_v63  ;;  %268 = vst.msk [vmem:[%s3871_s22] sm:$0xff] %vm267_vm0, %v4501_v9  ;;  %269 = vst.msk [vmem:[%s3871_s22 + $0x8] sm:$0xff] %vm267_vm0, %v4501_v9 }
 0x176   : > { %4519 = vst [vmem:[#allocation10_spill] sm:$0xff] %v3832_v4  ;;  %v2888_v11 = vadd.f32 %v2887_v61, %v2618_v43  ;;  %v2312_v32 = vadd.f32 %v2311_v35, %v1579_v20  ;;  %2941 = vst [vmem:[%s3641_s20 + $0x40] sm:$0xff] %v3835_v7 }
 0x177   : > { %v3841_v54 = vadd.f32 %v2872_v52, %v2604_v8  ;;  %2943 = vst [vmem:[%s3641_s20 + $0x50] sm:$0xff] %v3839_v53  ;;  %v3845_v27 = vpop.f32.mrf.mxu0  ;;  %v3851_v16 = vpop.f32.mrf.mxu1  ;;  %270 = vst.msk [vmem:[%s3871_s22 + $0x10] sm:$0xff] %vm267_vm0, %v4501_v9 }
 0x178   : > { %v3847_v38 = vadd.f32 %v2312_v32, %v1581_v63  ;;  %v2889_v62 = vadd.f32 %v2888_v11, %v2619_v58  ;;  %2942 = vst [vmem:[%s3641_s20 + $0x48] sm:$0xff] %v3845_v27  ;;  %2944 = vst [vmem:[%s3641_s20 + $0x58] sm:$0xff] %v3851_v16  ;;  %v2381_v11 = vmul.f32 %v3835_v7, %v3835_v7 }
 0x179   : > { %4520 = vst [vmem:[#allocation11_spill] sm:$0xff] %v3841_v54  ;;  %v1622_v1 = vpop.f32.mrf.mxu0  ;;  %v3857_v5 = vpop.f32.mrf.mxu1  ;;  %271 = vst.msk [vmem:[%s3871_s22 + $0x18] sm:$0xff] %vm267_vm0, %v4501_v9  ;;  %v2382_v4 = vmul.f32 %v3845_v27, %v3845_v27 }
 0x17a   : > { %4521 = vst [vmem:[#allocation12_spill] sm:$0xff] %v3847_v38  ;;  %v3855_v30 = vadd.f32 %v2889_v62, %v2620_v37  ;;  %272 = vst.msk [vmem:[%s3871_s22 + $0x20] sm:$0xff] %vm267_vm0, %v4501_v9  ;;  %v2397_v37 = vmul.f32 %v1622_v1, %v1622_v1  ;;  %v2636_v54 = vadd.f32 %v3752_v60, %v2381_v11 }
 0x17b   : > { %v1624_v3 = vpop.f32.mrf.mxu0  ;;  %v3859_v25 = vpop.f32.mrf.mxu1  ;;  %273 = vst.msk [vmem:[%s3871_s22 + $0x28] sm:$0xff] %vm267_vm0, %v4501_v9  ;;  %274 = vst.msk [vmem:[%s3871_s22 + $0x30] sm:$0xff] %vm267_vm0, %v4501_v9  ;;  %v2076_v15 = vadd.f32 %v3754_v2, %v1622_v1 }
 0x17c   : > { %4522 = vst [vmem:[#allocation13_spill] sm:$0xff] %v3855_v30  ;;  %275 = vst.msk [vmem:[%s3871_s22 + $0x38] sm:$0xff] %vm267_vm0, %v4501_v9  ;;  %v2059_v30 = vadd.f32 %v3748_v39, %v3835_v7  ;;  %v2653_v29 = vadd.f32 %v3757_v19, %v2397_v37  ;;  %v2398_v33 = vmul.f32 %v1624_v3, %v1624_v3 }
 0x17d   : > { %v1628_v40 = vpop.f32.mrf.mxu0  ;;  %v3861_v48 = vpop.f32.mrf.mxu1  ;;  %276 = vst.msk [vmem:[%s3871_s22 + $0x40] sm:$0xff] %vm267_vm0, %v4501_v9  ;;  %277 = vst.msk [vmem:[%s3871_s22 + $0x48] sm:$0xff] %vm267_vm0, %v4501_v9  ;;  %v2383_v39 = vmul.f32 %v3839_v53, %v3839_v53  ;;  %v2637_v2 = vadd.f32 %v2636_v54, %v2382_v4  ;;  %v2077_v1 = vadd.f32 %v2076_v15, %v1624_v3 }
 0x17e   : > { %278 = vst.msk [vmem:[%s3871_s22 + $0x50] sm:$0xff] %vm267_vm0, %v4501_v9  ;;  %279 = vst.msk [vmem:[%s3871_s22 + $0x58] sm:$0xff] %vm267_vm0, %v4501_v9  ;;  %v2413_v0 = vmul.f32 %v1628_v40, %v1628_v40  ;;  %v2060_v60 = vadd.f32 %v2059_v30, %v3845_v27  ;;  %v2093_v7 = vadd.f32 %v3760_v28, %v1628_v40 }
 0x17f   : > { %v3863_v10 = vpop.f32.mrf.mxu0  ;;  %v3865_v14 = vpop.f32.mrf.mxu1  ;;  %280 = vst.msk [vmem:[%s3871_s22 + $0x60] sm:$0xff] %vm267_vm0, %v4501_v9  ;;  %281 = vst.msk [vmem:[%s3871_s22 + $0x68] sm:$0xff] %vm267_vm0, %v4501_v9  ;;  %v2399_v15 = vmul.f32 %v3857_v5, %v3857_v5  ;;  %v2638_v4 = vadd.f32 %v2637_v2, %v2383_v39  ;;  %v2078_v54 = vadd.f32 %v2077_v1, %v3857_v5 }
 0x180   : > { %282 = vst.msk [vmem:[%s3871_s22 + $0x70] sm:$0xff] %vm267_vm0, %v4501_v9  ;;  %283 = vst.msk [vmem:[%s3871_s22 + $0x78] sm:$0xff] %vm267_vm0, %v4501_v9  ;;  %v2414_v19 = vmul.f32 %v3863_v10, %v3863_v10  ;;  %v2061_v28 = vadd.f32 %v2060_v60, %v3839_v53 }
 0x181   : > { %v1632_v21 = vpop.f32.mrf.mxu0  ;;  %v3873_v57 = vpop.f32.mrf.mxu1 }
 0x182   : > { %v2110_v50 = vadd.f32 %v3766_v55, %v1632_v21  ;;  %v2415_v55 = vmul.f32 %v3861_v48, %v3861_v48 }
 0x183   : > { %v1634_v24 = vpop.f32.mrf.mxu0  ;;  %v3923_v47 = vpop.f32.mrf.mxu1 }
 0x184   : > { %v2111_v53 = vadd.f32 %v2110_v50, %v1634_v24  ;;  %v2430_v40 = vmul.f32 %v1634_v24, %v1634_v24 }
 0x185   : > { %v1638_v46 = vpop.f32.mrf.mxu0  ;;  %v3925_v20 = vpop.f32.mrf.mxu1 }
 0x186   : > { %v2127_v39 = vadd.f32 %v3772_v12, %v1638_v46  ;;  %v2445_v60 = vmul.f32 %v1638_v46, %v1638_v46  ;;  %v4016_v12 = vadd.f32 %v2078_v54, %v3859_v25  ;;  %v2416_v46 = vmul.f32 %v3865_v14, %v3865_v14 }
 0x187   : > { %v3927_v36 = vpop.f32.mrf.mxu0  ;;  %v3929_v34 = vpop.f32.mrf.mxu1 }
 0x189   : > { %v3931_v61 = vpop.f32.mrf.mxu0  ;;  %v3933_v35 = vpop.f32.mrf.mxu1 }
 0x18a   : > { %v2461_v50 = vmul.f32 %v3931_v61, %v3931_v61 }
 0x18b   : > { %v3935_v43 = vpop.f32.mrf.mxu0  ;;  %v3937_v63 = vpop.f32.mrf.mxu1 }
 0x18c   : > { %4523 = vst [vmem:[#allocation14_spill] sm:$0xff] %v3937_v63 }
 0x18d   : > { %v3939_v8 = vpop.f32.mrf.mxu0  ;;  %v3941_v52 = vpop.f32.mrf.mxu1 }
 0x18f   : > { %v3943_v58 = vpop.f32.mrf.mxu0  ;;  %v3947_v32 = vpop.f32.mrf.mxu1 }
 0x190   : > { %4524 = vst [vmem:[#allocation15_spill] sm:$0xff] %v3947_v32  ;;  %v2654_v32 = vadd.f32 %v2653_v29, %v2398_v33 }
 0x191   : > { %v3949_v62 = vpop.f32.mrf.mxu0  ;;  %v3951_v9 = vpop.f32.mrf.mxu1 }
 0x192   : > { %4525 = vst [vmem:[#allocation16_spill] sm:$0xff] %v3951_v9  ;;  %v2429_v9 = vmul.f32 %v1632_v21, %v1632_v21  ;;  %v2655_v30 = vadd.f32 %v2654_v32, %v2399_v15  ;;  %v2704_v15 = vadd.f32 %v3776_v44, %v2445_v60  ;;  %v2477_v44 = vmul.f32 %v3939_v8, %v3939_v8 }
 0x193   : > { %v3955_v38 = vpop.f32.mrf.mxu0  ;;  %v3961_v59 = vpop.f32.mrf.mxu1 }
 0x194   : > { %4526 = vst [vmem:[#allocation17_spill] sm:$0xff] %v3961_v59  ;;  %v2670_v59 = vadd.f32 %v3764_v49, %v2413_v0  ;;  %v2094_v49 = vadd.f32 %v2093_v7, %v3863_v10  ;;  %v2687_v3 = vadd.f32 %v3769_v6, %v2429_v9  ;;  %v2384_v10 = vmul.f32 %v3851_v16, %v3851_v16 }
 0x195   : > { %v3964_v23 = vpop.f32.mrf.mxu0  ;;  %v3966_v26 = vpop.f32.mrf.mxu1  ;;  %v4004_v7 = vadd.f32 %v2061_v28, %v3851_v16 }
 0x196   : > { %v2671_v33 = vadd.f32 %v2670_v59, %v2414_v19  ;;  %v2400_v59 = vmul.f32 %v3859_v25, %v3859_v25  ;;  %v2095_v6 = vadd.f32 %v2094_v49, %v3861_v48  ;;  %v4013_v24 = vadd.f32 %v2638_v4, %v2384_v10 }
 0x197   : > { %v3972_v11 = vpop.f32.mrf.mxu0  ;;  %v3977_v37 = vpop.f32.mrf.mxu1  ;;  %v2431_v48 = vmul.f32 %v3873_v57, %v3873_v57  ;;  %v2688_v1 = vadd.f32 %v2687_v3, %v2430_v40  ;;  %v2112_v19 = vadd.f32 %v2111_v53, %v3873_v57  ;;  %v2128_v25 = vadd.f32 %v2127_v39, %v3927_v36 }
 0x198   : > { %v2672_v16 = vadd.f32 %v2671_v33, %v2415_v55  ;;  %v4022_v2 = vadd.f32 %v2655_v30, %v2400_v59  ;;  %v2446_v49 = vmul.f32 %v3927_v36, %v3927_v36  ;;  %v2144_v4 = vadd.f32 %v3778_v13, %v3931_v61 }
 0x199   : > { %v3980_v63 = vpop.f32.mrf.mxu0  ;;  %v3982_v27 = vpop.f32.mrf.mxu1  ;;  %v4038_v55 = vadd.f32 %v2095_v6, %v3865_v14  ;;  %v2721_v33 = vadd.f32 %v3781_v56, %v2461_v50  ;;  %v2462_v57 = vmul.f32 %v3935_v43, %v3935_v43  ;;  %v2432_v13 = vmul.f32 %v3923_v47, %v3923_v47 }
 0x19a   : > { %v4047_v3 = vadd.f32 %v2672_v16, %v2416_v46  ;;  %v2447_v36 = vmul.f32 %v3925_v20, %v3925_v20  ;;  %v2493_v14 = vmul.f32 %v3949_v62, %v3949_v62  ;;  %v4058_v61 = vadd.f32 %v2112_v19, %v3923_v47 }
 0x19b   : > { %v3988_v0 = vpop.f32.mrf.mxu0  ;;  %v3993_v29 = vpop.f32.mrf.mxu1  ;;  %v2689_v53 = vadd.f32 %v2688_v1, %v2431_v48  ;;  %v2161_v40 = vadd.f32 %v3784_v45, %v3939_v8  ;;  %v2509_v10 = vmul.f32 %v3964_v23, %v3964_v23  ;;  %v2705_v60 = vadd.f32 %v2704_v15, %v2446_v49 }
 0x19c   : > { %v2129_v59 = vadd.f32 %v2128_v25, %v3925_v20  ;;  %v2448_v6 = vmul.f32 %v3929_v34, %v3929_v34  ;;  %v2145_v50 = vadd.f32 %v2144_v4, %v3935_v43  ;;  %v2463_v47 = vmul.f32 %v3933_v35, %v3933_v35 }
 0x19d   : > { %v3996_v21 = vpop.f32.mrf.mxu0  ;;  %v4001_v5 = vpop.f32.mrf.mxu1  ;;  %v2722_v16 = vadd.f32 %v2721_v33, %v2462_v57  ;;  %v2738_v45 = vadd.f32 %v3788_v22, %v2477_v44  ;;  %v2478_v8 = vmul.f32 %v3943_v58, %v3943_v58  ;;  %v2178_v20 = vadd.f32 %v3790_v41, %v3949_v62 }
 0x19e   : > { %v2755_v1 = vadd.f32 %v3793_v17, %v2493_v14  ;;  %v2494_v43 = vmul.f32 %v3955_v38, %v3955_v38  ;;  %v2525_v19 = vmul.f32 %v3980_v63, %v3980_v63  ;;  %v2162_v22 = vadd.f32 %v2161_v40, %v3943_v58 }
 0x19f   : > { %v4011_v9 = vpop.f32.mrf.mxu0  ;;  %v4020_v32 = vpop.f32.mrf.mxu1  ;;  %v2195_v25 = vadd.f32 %v3796_v18, %v3964_v23  ;;  %v2772_v49 = vadd.f32 %v3800_v51, %v2509_v10  ;;  %v2510_v41 = vmul.f32 %v3972_v11, %v3972_v11  ;;  %v4096_v17 = vadd.f32 %v2689_v53, %v2432_v13 }
 0x1a0   : > { %v4099_v4 = vadd.f32 %v2129_v59, %v3929_v34  ;;  %v2706_v33 = vadd.f32 %v2705_v60, %v2447_v36  ;;  %v2146_v57 = vadd.f32 %v2145_v50, %v3933_v35  ;;  %v2723_v58 = vadd.f32 %v2722_v16, %v2463_v47  ;;  %v4528_v50 = vld [vmem:[#allocation16_spill] sm:$0xff]  ;;  %v4529_v16 = vld [vmem:[#allocation2_spill] sm:$0xff] }
 0x1a1   : > { %v4027_v28 = vpop.f32.mrf.mxu0  ;;  %v4035_v54 = vpop.f32.mrf.mxu1  ;;  %v2479_v18 = vmul.f32 %v3941_v52, %v3941_v52  ;;  %v2739_v51 = vadd.f32 %v2738_v45, %v2478_v8  ;;  %v2212_v23 = vadd.f32 %v3802_v31, %v3980_v63  ;;  %v2179_v13 = vadd.f32 %v2178_v20, %v3955_v38  ;;  %v4527_v38 = vld [vmem:[#allocation14_spill] sm:$0xff] }
 0x1a2   : > { %v2756_v53 = vadd.f32 %v2755_v1, %v2494_v43  ;;  %v2789_v34 = vadd.f32 %v3805_v42, %v2525_v19  ;;  %v2526_v35 = vmul.f32 %v3988_v0, %v3988_v0  ;;  %v2163_v40 = vadd.f32 %v2162_v22, %v3941_v52 }
 0x1a3   : > { %v4045_v30 = vpop.f32.mrf.mxu0  ;;  %v4055_v56 = vpop.f32.mrf.mxu1  ;;  %v2511_v10 = vmul.f32 %v3966_v26, %v3966_v26  ;;  %v2196_v60 = vadd.f32 %v2195_v25, %v3972_v11  ;;  %v2773_v31 = vadd.f32 %v2772_v49, %v2510_v41  ;;  %v4122_v59 = vadd.f32 %v2706_v33, %v2448_v6  ;;  %v4530_v11 = vld [vmem:[#allocation15_spill] sm:$0xff] }
 0x1a4   : > { %v2464_v42 = vmul.f32 %v4527_v38, %v4527_v38  ;;  %v2495_v47 = vmul.f32 %v4528_v50, %v4528_v50  ;;  %v2229_v45 = vadd.f32 %v4529_v16, %v3996_v21  ;;  %v4133_v8 = vadd.f32 %v2146_v57, %v4527_v38 }
 0x1a5   : > { %v4064_v39 = vpop.f32.mrf.mxu0  ;;  %v4070_v46 = vpop.f32.mrf.mxu1  ;;  %v2480_v20 = vmul.f32 %v4530_v11, %v4530_v11  ;;  %v2213_v6 = vadd.f32 %v2212_v23, %v3988_v0  ;;  %v2541_v1 = vmul.f32 %v3996_v21, %v3996_v21  ;;  %v2740_v19 = vadd.f32 %v2739_v51, %v2479_v18  ;;  %v4532_v21 = vld [vmem:[#allocation17_spill] sm:$0xff] }
 0x1a6   : > { %v2180_v22 = vadd.f32 %v2179_v13, %v4528_v50  ;;  %v2757_v25 = vadd.f32 %v2756_v53, %v2495_v47  ;;  %v2790_v49 = vadd.f32 %v2789_v34, %v2526_v35  ;;  %v4145_v33 = vadd.f32 %v2723_v58, %v2464_v42  ;;  %v4534_v34 = vld [vmem:[#allocation3_spill] sm:$0xff] }
 0x1a7   : > { %v4077_v48 = vpop.f32.mrf.mxu0  ;;  %v4086_v15 = vpop.f32.mrf.mxu1  ;;  %v4148_v57 = vadd.f32 %v2163_v40, %v4530_v11  ;;  %v2197_v38 = vadd.f32 %v2196_v60, %v3966_v26  ;;  %v2774_v0 = vadd.f32 %v2773_v31, %v2511_v10  ;;  %v2496_v16 = vmul.f32 %v4532_v21, %v4532_v21  ;;  %v4537_v11 = vld [vmem:[#allocation4_spill] sm:$0xff] }
 0x1a8   : > { %v2512_v18 = vmul.f32 %v3977_v37, %v3977_v37  ;;  %v2527_v51 = vmul.f32 %v3982_v27, %v3982_v27  ;;  %v2230_v58 = vadd.f32 %v2229_v45, %v4011_v9  ;;  %v2214_v53 = vadd.f32 %v2213_v6, %v3982_v27 }
 0x1a9   : > { %v4094_v62 = vpop.f32.mrf.mxu0  ;;  %v4102_v44 = vpop.f32.mrf.mxu1  ;;  %v2806_v26 = vadd.f32 %v4534_v34, %v2541_v1  ;;  %v2542_v35 = vmul.f32 %v4011_v9, %v4011_v9  ;;  %v2557_v40 = vmul.f32 %v4027_v28, %v4027_v28  ;;  %v4170_v60 = vadd.f32 %v2740_v19, %v2480_v20 }
 0x1aa   : > { %v4173_v31 = vadd.f32 %v2180_v22, %v4532_v21  ;;  %v4175_v42 = vadd.f32 %v2757_v25, %v2496_v16  ;;  %v2791_v50 = vadd.f32 %v2790_v49, %v2527_v51  ;;  %v4180_v47 = vadd.f32 %v2197_v38, %v3977_v37 }
 0x1ab   : > { %v4108_v14 = vpop.f32.mrf.mxu0  ;;  %v4114_v36 = vpop.f32.mrf.mxu1  ;;  %v4182_v9 = vadd.f32 %v2774_v0, %v2512_v18  ;;  %v2528_v45 = vmul.f32 %v3993_v29, %v3993_v29  ;;  %v2246_v20 = vadd.f32 %v4537_v11, %v4027_v28  ;;  %v2543_v1 = vmul.f32 %v4001_v5, %v4001_v5  ;;  %v4538_v0 = vld [vmem:[#allocation5_spill] sm:$0xff] }
 0x1ac   : > { %v2231_v19 = vadd.f32 %v2230_v58, %v4001_v5  ;;  %v4194_v49 = vadd.f32 %v2214_v53, %v3993_v29  ;;  %v2807_v38 = vadd.f32 %v2806_v26, %v2542_v35  ;;  %v2823_v21 = vadd.f32 %v4538_v0, %v2557_v40 }
 0x1ad   : > { %v4120_v63 = vpop.f32.mrf.mxu0  ;;  %v4130_v52 = vpop.f32.mrf.mxu1  ;;  %v2558_v28 = vmul.f32 %v4045_v30, %v4045_v30  ;;  %v4200_v18 = vadd.f32 %v2791_v50, %v2528_v45  ;;  %v2544_v5 = vmul.f32 %v4020_v32, %v4020_v32  ;;  %v2559_v58 = vmul.f32 %v4035_v54, %v4035_v54 }
 0x1ae   : > { %v2247_v53 = vadd.f32 %v2246_v20, %v4045_v30  ;;  %v4211_v40 = vadd.f32 %v2231_v19, %v4020_v32 }
 0x1af   : > { %v4140_v43 = vpop.f32.mrf.mxu0  ;;  %v4143_v41 = vpop.f32.mrf.mxu1 }
 0x1b0   : > { %v2248_v19 = vadd.f32 %v2247_v53, %v4035_v54 }
 0x1b1   : > { %v4151_v23 = vpop.f32.mrf.mxu0  ;;  %v4160_v13 = vpop.f32.mrf.mxu1 }
 0x1b2   : > { %4531 = vst [vmem:[#allocation14_spill] sm:$0xff] %v4151_v23  ;;  %4533 = vst [vmem:[#allocation16_spill] sm:$0xff] %v4160_v13 }
 0x1b3   : > { %v4168_v10 = vpop.f32.mrf.mxu0  ;;  %v4177_v27 = vpop.f32.mrf.mxu1 }
 0x1b4   : > { %4535 = vst [vmem:[#allocation2_spill] sm:$0xff] %v4168_v10  ;;  %4536 = vst [vmem:[#allocation15_spill] sm:$0xff] %v4177_v27 }
 0x1b5   : > { %v1844_v6 = vpop.f32.mrf.mxu0  ;;  %v1957_v37 = vpop.f32.mrf.mxu1 }
 0x1b6   : > { %v2063_v22 = vadd.f32 %v4004_v7, %v1844_v6  ;;  %v2385_v25 = vmul.f32 %v1844_v6, %v1844_v6  ;;  %2945 = vst [vmem:[%s3641_s20 + $0x60] sm:$0xff] %v1844_v6  ;;  %2947 = vst [vmem:[%s3641_s20 + $0x70] sm:$0xff] %v1957_v37  ;;  %v2387_v34 = vmul.f32 %v1957_v37, %v1957_v37 }
 0x1b7   : > { %v1846_v16 = vpop.f32.mrf.mxu0  ;;  %v1959_v29 = vpop.f32.mrf.mxu1  ;;  %v2808_v6 = vadd.f32 %v2807_v38, %v2543_v1 }
 0x1b8   : > { %v2640_v7 = vadd.f32 %v4013_v24, %v2385_v25  ;;  %v2064_v51 = vadd.f32 %v2063_v22, %v1846_v16  ;;  %2946 = vst [vmem:[%s3641_s20 + $0x68] sm:$0xff] %v1846_v16  ;;  %v2386_v26 = vmul.f32 %v1846_v16, %v1846_v16  ;;  %2948 = vst [vmem:[%s3641_s20 + $0x78] sm:$0xff] %v1959_v29 }
 0x1b9   : > { %v1848_v35 = vpop.f32.mrf.mxu0  ;;  %v1961_v11 = vpop.f32.mrf.mxu1  ;;  %v2824_v22 = vadd.f32 %v2823_v21, %v2558_v28  ;;  %v4216_v25 = vmul.f32 %v4055_v56, %v4055_v56  ;;  %v2388_v1 = vmul.f32 %v1959_v29, %v1959_v29 }
 0x1ba   : > { %v2080_v50 = vadd.f32 %v4016_v12, %v1848_v35  ;;  %v2401_v45 = vmul.f32 %v1848_v35, %v1848_v35  ;;  %v2065_v24 = vadd.f32 %v2064_v51, %v1957_v37  ;;  %v2641_v30 = vadd.f32 %v2640_v7, %v2386_v26  ;;  %v4539_v12 = vld [vmem:[#allocation6_spill] sm:$0xff] }
 0x1bb   : > { %v1850_v0 = vpop.f32.mrf.mxu0  ;;  %v1963_v13 = vpop.f32.mrf.mxu1  ;;  %v2263_v35 = vadd.f32 %v4539_v12, %v4064_v39  ;;  %v2403_v21 = vmul.f32 %v1961_v11, %v1961_v11 }
 0x1bc   : > { %v2657_v20 = vadd.f32 %v4022_v2, %v2401_v45  ;;  %v2081_v16 = vadd.f32 %v2080_v50, %v1850_v0  ;;  %v2402_v27 = vmul.f32 %v1850_v0, %v1850_v0  ;;  %v2066_v32 = vadd.f32 %v2065_v24, %v1959_v29 }
 0x1bd   : > { %v1854_v37 = vpop.f32.mrf.mxu0  ;;  %v2642_v38 = vadd.f32 %v2641_v30, %v2387_v34  ;;  %v1967_v7 = vpop.f32.mrf.mxu1  ;;  %v2404_v2 = vmul.f32 %v1963_v13, %v1963_v13  ;;  %v4224_v29 = vadd.f32 %v2808_v6, %v2544_v5  ;;  %v2825_v34 = vadd.f32 %v2824_v22, %v2559_v58 }
 0x1be   : > { %v2658_v28 = vadd.f32 %v2657_v20, %v2402_v27  ;;  %v2097_v51 = vadd.f32 %v4038_v55, %v1854_v37  ;;  %v2417_v10 = vmul.f32 %v1854_v37, %v1854_v37  ;;  %2067 = vadd.xlane.f32.xlu0 %v2066_v32  ;;  %v2419_v26 = vmul.f32 %v1967_v7, %v1967_v7 }
 0x1bf   : > { %v1856_v50 = vpop.f32.mrf.mxu0  ;;  %v2643_v45 = vadd.f32 %v2642_v38, %v2388_v1  ;;  %v2082_v24 = vadd.f32 %v2081_v16, %v1961_v11  ;;  %v1969_v12 = vpop.f32.mrf.mxu1  ;;  %v2573_v55 = vmul.f32 %v4064_v39, %v4064_v39  ;;  %v4230_v27 = vmul.f32 %v4070_v46, %v4070_v46 }
 0x1c0   : > { %v2674_v54 = vadd.f32 %v4047_v3, %v2417_v10  ;;  %v2098_v53 = vadd.f32 %v2097_v51, %v1856_v50  ;;  %v2418_v0 = vmul.f32 %v1856_v50, %v1856_v50  ;;  %v2659_v23 = vadd.f32 %v2658_v28, %v2403_v21 }
 0x1c1   : > { %v1858_v30 = vpop.f32.mrf.mxu0  ;;  %v1971_v10 = vpop.f32.mrf.mxu1  ;;  %v2264_v5 = vadd.f32 %v2263_v35, %v4077_v48  ;;  %v2420_v6 = vmul.f32 %v1969_v12, %v1969_v12  ;;  %v2083_v22 = vadd.f32 %v2082_v24, %v1963_v13  ;;  %v2574_v13 = vmul.f32 %v4077_v48, %v4077_v48 }
 0x1c2   : > { %v2675_v20 = vadd.f32 %v2674_v54, %v2418_v0  ;;  %v2114_v11 = vadd.f32 %v4058_v61, %v1858_v30  ;;  %v2433_v3 = vmul.f32 %v1858_v30, %v1858_v30  ;;  %2644 = vadd.xlane.f32.xlu0 %v2643_v45  ;;  %v2660_v16 = vadd.f32 %v2659_v23, %v2404_v2 }
 0x1c3   : > { %v1860_v58 = vpop.f32.mrf.mxu0  ;;  %v2099_v32 = vadd.f32 %v2098_v53, %v1967_v7  ;;  %v1973_v38 = vpop.f32.mrf.mxu1  ;;  %v4242_v61 = vadd.f32 %v2248_v19, %v4055_v56  ;;  %v4249_v35 = vmul.f32 %v4086_v15, %v4086_v15  ;;  %v4541_v51 = vmov 0.0  }
 0x1c4   : > { %v2691_v39 = vadd.f32 %v4096_v17, %v2433_v3  ;;  %v2115_v37 = vadd.f32 %v2114_v11, %v1860_v58  ;;  %v2434_v1 = vmul.f32 %v1860_v58, %v1860_v58  ;;  %2661 = vadd.xlane.f32.xlu1 %v2660_v16  ;;  %v2676_v21 = vadd.f32 %v2675_v20, %v2419_v26  ;;  %v4540_v17 = vld [vmem:[#allocation7_spill] sm:$0xff] }
 0x1c5   : > { %v2840_v23 = vadd.f32 %v4540_v17, %v2573_v55  ;;  %v1864_v28 = vpop.f32.mrf.mxu0  ;;  %284 = vst.msk [vmem:[%s4239_s25] sm:$0xff] %vm267_vm0, %v4541_v51  ;;  %285 = vst.msk [vmem:[%s4239_s25 + $0x8] sm:$0xff] %vm267_vm0, %v4541_v51  ;;  %v1977_v7 = vpop.f32.mrf.mxu1  ;;  %v2100_v2 = vadd.f32 %v2099_v32, %v1969_v12  ;;  %v4301_v26 = vadd.f32 %v2825_v34, %v4216_v25 }
 0x1c6   : > { %286 = vst.msk [vmem:[%s4239_s25 + $0x10] sm:$0xff] %vm267_vm0, %v4541_v51  ;;  %287 = vst.msk [vmem:[%s4239_s25 + $0x18] sm:$0xff] %vm267_vm0, %v4541_v51  ;;  %v2692_v56 = vadd.f32 %v2691_v39, %v2434_v1  ;;  %v2131_v48 = vadd.f32 %v4099_v4, %v1864_v28  ;;  %v2449_v19 = vmul.f32 %v1864_v28, %v1864_v28  ;;  %2084 = vadd.xlane.f32.xlu0 %v2083_v22  ;;  %v4542_v4 = vld [vmem:[#allocation8_spill] sm:$0xff] }
 0x1c7   : > { %288 = vst.msk [vmem:[%s4239_s25 + $0x20] sm:$0xff] %vm267_vm0, %v4541_v51  ;;  %289 = vst.msk [vmem:[%s4239_s25 + $0x28] sm:$0xff] %vm267_vm0, %v4541_v51  ;;  %v2265_v50 = vadd.f32 %v2264_v5, %v4070_v46  ;;  %v2435_v45 = vmul.f32 %v1971_v10, %v1971_v10  ;;  %v1866_v24 = vpop.f32.mrf.mxu0  ;;  %v2116_v54 = vadd.f32 %v2115_v37, %v1971_v10  ;;  %v1979_v30 = vpop.f32.mrf.mxu1 }
 0x1c8   : > { %290 = vst.msk [vmem:[%s4239_s25 + $0x30] sm:$0xff] %vm267_vm0, %v4541_v51  ;;  %291 = vst.msk [vmem:[%s4239_s25 + $0x38] sm:$0xff] %vm267_vm0, %v4541_v51  ;;  %v2708_v53 = vadd.f32 %v4122_v59, %v2449_v19  ;;  %v2132_v0 = vadd.f32 %v2131_v48, %v1866_v24  ;;  %v2450_v55 = vmul.f32 %v1866_v24, %v1866_v24  ;;  %2101 = vadd.xlane.f32.xlu1 %v2100_v2 }
 0x1c9   : > { %292 = vst.msk [vmem:[%s4239_s25 + $0x40] sm:$0xff] %vm267_vm0, %v4541_v51  ;;  %293 = vst.msk [vmem:[%s4239_s25 + $0x48] sm:$0xff] %vm267_vm0, %v4541_v51  ;;  %v2677_v20 = vadd.f32 %v2676_v21, %v2420_v6  ;;  %v2280_v11 = vadd.f32 %v4542_v4, %v4094_v62  ;;  %v2451_v3 = vmul.f32 %v1977_v7, %v1977_v7  ;;  %v1868_v12 = vpop.f32.mrf.mxu0  ;;  %v1981_v58 = vpop.f32.mrf.mxu1 }
 0x1ca   : > { %294 = vst.msk [vmem:[%s4239_s25 + $0x50] sm:$0xff] %vm267_vm0, %v4541_v51  ;;  %295 = vst.msk [vmem:[%s4239_s25 + $0x58] sm:$0xff] %vm267_vm0, %v4541_v51  ;;  %v2117_v16 = vadd.f32 %v2116_v54, %v1973_v38  ;;  %v2693_v25 = vadd.f32 %v2692_v56, %v2435_v45  ;;  %v2709_v34 = vadd.f32 %v2708_v53, %v2450_v55 }
 0x1cb   : > { %296 = vst.msk [vmem:[%s4239_s25 + $0x60] sm:$0xff] %vm267_vm0, %v4541_v51  ;;  %297 = vst.msk [vmem:[%s4239_s25 + $0x68] sm:$0xff] %vm267_vm0, %v4541_v51  ;;  %v2148_v46 = vadd.f32 %v4133_v8, %v1868_v12  ;;  %v2465_v5 = vmul.f32 %v1868_v12, %v1868_v12  ;;  %2678 = vadd.xlane.f32.xlu0 %v2677_v20  ;;  %v2133_v10 = vadd.f32 %v2132_v0, %v1977_v7  ;;  %v1870_v39 = vpop.f32.mrf.mxu0  ;;  %v1983_v17 = vpop.f32.mrf.mxu1  ;;  %v4543_v7 = vld [vmem:[#allocation9_spill] sm:$0xff] }
 0x1cc   : > { %298 = vst.msk [vmem:[%s4239_s25 + $0x70] sm:$0xff] %vm267_vm0, %v4541_v51  ;;  %299 = vst.msk [vmem:[%s4239_s25 + $0x78] sm:$0xff] %vm267_vm0, %v4541_v51  ;;  %v2841_v59 = vadd.f32 %v2840_v23, %v2574_v13  ;;  %v2589_v22 = vmul.f32 %v4094_v62, %v4094_v62  ;;  %v2436_v32 = vmul.f32 %v1973_v38, %v1973_v38  ;;  %2118 = vadd.xlane.f32.xlu1 %v2117_v16 }
 0x1cd   : > { %v2452_v6 = vmul.f32 %v1979_v30, %v1979_v30  ;;  %v2725_v37 = vadd.f32 %v4145_v33, %v2465_v5  ;;  %v2149_v1 = vadd.f32 %v2148_v46, %v1870_v39  ;;  %v2466_v21 = vmul.f32 %v1870_v39, %v1870_v39  ;;  %v1874_v23 = vpop.f32.mrf.mxu0  ;;  %v1987_v33 = vpop.f32.mrf.mxu1  ;;  %v4544_v39 = vld [vmem:[#allocation10_spill] sm:$0xff] }
 0x1ce   : > { %v2134_v28 = vadd.f32 %v2133_v10, %v1979_v30  ;;  %v4312_v8 = vadd.f32 %v2265_v50, %v4086_v15  ;;  %v4316_v51 = vmul.f32 %v4102_v44, %v4102_v44  ;;  %v2694_v13 = vadd.f32 %v2693_v25, %v2436_v32 }
 0x1cf   : > { %v2710_v62 = vadd.f32 %v2709_v34, %v2451_v3  ;;  %v2726_v38 = vadd.f32 %v2725_v37, %v2466_v21  ;;  %v2165_v56 = vadd.f32 %v4148_v57, %v1874_v23  ;;  %v2481_v48 = vmul.f32 %v1874_v23, %v1874_v23  ;;  %v1876_v24 = vpop.f32.mrf.mxu0  ;;  %v1989_v55 = vpop.f32.mrf.mxu1 }
 0x1d0   : > { %2135 = vadd.xlane.f32.xlu0 %v2134_v28  ;;  %v2150_v19 = vadd.f32 %v2149_v1, %v1981_v58  ;;  %v2857_v2 = vadd.f32 %v4543_v7, %v2589_v22  ;;  %v2281_v45 = vadd.f32 %v2280_v11, %v4108_v14  ;;  %v2590_v15 = vmul.f32 %v4108_v14, %v4108_v14 }
 0x1d1   : > { %v2467_v50 = vmul.f32 %v1981_v58, %v1981_v58  ;;  %v2742_v54 = vadd.f32 %v4170_v60, %v2481_v48  ;;  %v2166_v53 = vadd.f32 %v2165_v56, %v1876_v24  ;;  %v2482_v0 = vmul.f32 %v1876_v24, %v1876_v24  ;;  %2695 = vadd.xlane.f32.xlu1 %v2694_v13  ;;  %v1878_v4 = vpop.f32.mrf.mxu0  ;;  %v1991_v14 = vpop.f32.mrf.mxu1 }
 0x1d2   : > { %v2711_v57 = vadd.f32 %v2710_v62, %v2452_v6  ;;  %v2842_v30 = vadd.f32 %v2841_v59, %v4230_v27  ;;  %v2483_v20 = vmul.f32 %v1987_v33, %v1987_v33  ;;  %v2151_v3 = vadd.f32 %v2150_v19, %v1983_v17 }
 0x1d3   : > { %v2727_v12 = vadd.f32 %v2726_v38, %v2467_v50  ;;  %v2743_v16 = vadd.f32 %v2742_v54, %v2482_v0  ;;  %v2182_v11 = vadd.f32 %v4173_v31, %v1878_v4  ;;  %v2497_v25 = vmul.f32 %v1878_v4, %v1878_v4  ;;  %v1880_v10 = vpop.f32.mrf.mxu0  ;;  %v1993_v32 = vpop.f32.mrf.mxu1 }
 0x1d4   : > { %2712 = vadd.xlane.f32.xlu0 %v2711_v57  ;;  %v2167_v34 = vadd.f32 %v2166_v53, %v1987_v33  ;;  %v2858_v46 = vadd.f32 %v2857_v2, %v2590_v15  ;;  %v4328_v60 = vmul.f32 %v4114_v36, %v4114_v36  ;;  %v2468_v5 = vmul.f32 %v1983_v17, %v1983_v17 }
 0x1d5   : > { %v2484_v58 = vmul.f32 %v1989_v55, %v1989_v55  ;;  %v2759_v27 = vadd.f32 %v4175_v42, %v2497_v25  ;;  %v2183_v59 = vadd.f32 %v2182_v11, %v1880_v10  ;;  %v2498_v22 = vmul.f32 %v1880_v10, %v1880_v10  ;;  %2152 = vadd.xlane.f32.xlu1 %v2151_v3  ;;  %v1884_v1 = vpop.f32.mrf.mxu0  ;;  %v1997_v62 = vpop.f32.mrf.mxu1 }
 0x1d6   : > { %v2168_v6 = vadd.f32 %v2167_v34, %v1989_v55  ;;  %v2282_v31 = vadd.f32 %v2281_v45, %v4102_v44  ;;  %v2297_v37 = vadd.f32 %v4544_v39, %v4120_v63  ;;  %v2728_v21 = vadd.f32 %v2727_v12, %v2468_v5 }
 0x1d7   : > { %v2744_v28 = vadd.f32 %v2743_v16, %v2483_v20  ;;  %v2760_v23 = vadd.f32 %v2759_v27, %v2498_v22  ;;  %v2199_v17 = vadd.f32 %v4180_v47, %v1884_v1  ;;  %v2513_v13 = vmul.f32 %v1884_v1, %v1884_v1  ;;  %v1886_v33 = vpop.f32.mrf.mxu0  ;;  %v1999_v2 = vpop.f32.mrf.mxu1 }
 0x1d8   : > { %2169 = vadd.xlane.f32.xlu0 %v2168_v6  ;;  %v2184_v42 = vadd.f32 %v2183_v59, %v1991_v14  ;;  %v4336_v38 = vadd.f32 %v2842_v30, %v4249_v35  ;;  %v2605_v56 = vmul.f32 %v4120_v63, %v4120_v63  ;;  %v4342_v44 = vmul.f32 %v4130_v52, %v4130_v52 }
 0x1d9   : > { %v2499_v48 = vmul.f32 %v1991_v14, %v1991_v14  ;;  %v2776_v19 = vadd.f32 %v4182_v9, %v2513_v13  ;;  %v2200_v7 = vadd.f32 %v2199_v17, %v1886_v33  ;;  %v2514_v47 = vmul.f32 %v1886_v33, %v1886_v33  ;;  %2729 = vadd.xlane.f32.xlu1 %v2728_v21  ;;  %v1888_v50 = vpop.f32.mrf.mxu0  ;;  %v2001_v55 = vpop.f32.mrf.mxu1  ;;  %v4545_v14 = vld [vmem:[#allocation11_spill] sm:$0xff] }
 0x1da   : > { %v2745_v45 = vadd.f32 %v2744_v28, %v2484_v58  ;;  %v4346_v15 = vadd.f32 %v2282_v31, %v4114_v36  ;;  %v2515_v35 = vmul.f32 %v1997_v62, %v1997_v62  ;;  %v2185_v24 = vadd.f32 %v2184_v42, %v1993_v32  ;;  %v4546_v28 = vld [vmem:[#allocation14_spill] sm:$0xff] }
 0x1db   : > { %v2761_v63 = vadd.f32 %v2760_v23, %v2499_v48  ;;  %v2777_v54 = vadd.f32 %v2776_v19, %v2514_v47  ;;  %v2216_v53 = vadd.f32 %v4194_v49, %v1888_v50  ;;  %v2529_v0 = vmul.f32 %v1888_v50, %v1888_v50  ;;  %v1890_v3 = vpop.f32.mrf.mxu0  ;;  %v2003_v11 = vpop.f32.mrf.mxu1  ;;  %v4547_v19 = vld [vmem:[#allocation12_spill] sm:$0xff] }
 0x1dc   : > { %2746 = vadd.xlane.f32.xlu0 %v2745_v45  ;;  %v2201_v57 = vadd.f32 %v2200_v7, %v1997_v62  ;;  %v2859_v9 = vadd.f32 %v2858_v46, %v4316_v51  ;;  %v2298_v30 = vadd.f32 %v2297_v37, %v4140_v43  ;;  %v2500_v20 = vmul.f32 %v1993_v32, %v1993_v32 }
 0x1dd   : > { %v2516_v4 = vmul.f32 %v1999_v2, %v1999_v2  ;;  %v2793_v36 = vadd.f32 %v4200_v18, %v2529_v0  ;;  %v2217_v12 = vadd.f32 %v2216_v53, %v1890_v3  ;;  %v2530_v16 = vmul.f32 %v1890_v3, %v1890_v3  ;;  %2186 = vadd.xlane.f32.xlu1 %v2185_v24  ;;  %v1894_v5 = vpop.f32.mrf.mxu0  ;;  %v2007_v59 = vpop.f32.mrf.mxu1  ;;  %v4548_v53 = vld [vmem:[#allocation13_spill] sm:$0xff]  ;;  %v4549_v0 = vld [vmem:[#allocation2_spill] sm:$0xff] }
 0x1de   : > { %v2202_v25 = vadd.f32 %v2201_v57, %v1999_v2  ;;  %v2874_v49 = vadd.f32 %v4545_v14, %v2605_v56  ;;  %v2606_v34 = vmul.f32 %v4140_v43, %v4140_v43  ;;  %v2762_v58 = vadd.f32 %v2761_v63, %v2500_v20 }
 0x1df   : > { %v2778_v51 = vadd.f32 %v2777_v54, %v2515_v35  ;;  %v2794_v46 = vadd.f32 %v2793_v36, %v2530_v16  ;;  %v2233_v10 = vadd.f32 %v4211_v40, %v1894_v5  ;;  %v2545_v27 = vmul.f32 %v1894_v5, %v1894_v5  ;;  %v1896_v31 = vpop.f32.mrf.mxu0  ;;  %v2009_v1 = vpop.f32.mrf.mxu1  ;;  %v4550_v16 = vld [vmem:[#allocation16_spill] sm:$0xff] }
 0x1e0   : > { %2203 = vadd.xlane.f32.xlu0 %v2202_v25  ;;  %v2218_v18 = vadd.f32 %v2217_v12, %v2001_v55  ;;  %v4357_v22 = vadd.f32 %v2859_v9, %v4328_v60  ;;  %v4360_v32 = vadd.f32 %v2298_v30, %v4130_v52  ;;  %v4364_v6 = vmul.f32 %v4143_v41, %v4143_v41 }
 0x1e1   : > { %v2531_v43 = vmul.f32 %v2001_v55, %v2001_v55  ;;  %v2810_v39 = vadd.f32 %v4224_v29, %v2545_v27  ;;  %v2234_v37 = vadd.f32 %v2233_v10, %v1896_v31  ;;  %v2546_v40 = vmul.f32 %v1896_v31, %v1896_v31  ;;  %2763 = vadd.xlane.f32.xlu1 %v2762_v58  ;;  %v1898_v17 = vpop.f32.mrf.mxu0  ;;  %v2011_v48 = vpop.f32.mrf.mxu1 }
 0x1e2   : > { %v2779_v21 = vadd.f32 %v2778_v51, %v2516_v4  ;;  %v2621_v60 = vmul.f32 %v4546_v28, %v4546_v28  ;;  %v2547_v23 = vmul.f32 %v2007_v59, %v2007_v59  ;;  %v2219_v52 = vadd.f32 %v2218_v18, %v2003_v11 }
 0x1e3   : > { %v2795_v13 = vadd.f32 %v2794_v46, %v2531_v43  ;;  %v2811_v62 = vadd.f32 %v2810_v39, %v2546_v40  ;;  %v2250_v42 = vadd.f32 %v4242_v61, %v1898_v17  ;;  %v2561_v56 = vmul.f32 %v1898_v17, %v1898_v17  ;;  %v1900_v45 = vpop.f32.mrf.mxu0  ;;  %v2013_v63 = vpop.f32.mrf.mxu1 }
 0x1e4   : > { %2780 = vadd.xlane.f32.xlu0 %v2779_v21  ;;  %v2235_v33 = vadd.f32 %v2234_v37, %v2007_v59  ;;  %v2875_v29 = vadd.f32 %v2874_v49, %v2606_v34  ;;  %v2314_v7 = vadd.f32 %v4547_v19, %v4546_v28  ;;  %v2532_v47 = vmul.f32 %v2003_v11, %v2003_v11 }
 0x1e5   : > { %v2548_v2 = vmul.f32 %v2009_v1, %v2009_v1  ;;  %v2827_v35 = vadd.f32 %v4301_v26, %v2561_v56  ;;  %v2251_v50 = vadd.f32 %v2250_v42, %v1900_v45  ;;  %v2562_v24 = vmul.f32 %v1900_v45, %v1900_v45  ;;  %2220 = vadd.xlane.f32.xlu1 %v2219_v52  ;;  %v1904_v57 = vpop.f32.mrf.mxu0  ;;  %v2017_v36 = vpop.f32.mrf.mxu1 }
 0x1e6   : > { %v2236_v54 = vadd.f32 %v2235_v33, %v2009_v1  ;;  %v2891_v61 = vadd.f32 %v4548_v53, %v2621_v60  ;;  %v2622_v55 = vmul.f32 %v4549_v0, %v4549_v0  ;;  %v2796_v9 = vadd.f32 %v2795_v13, %v2532_v47 }
 0x1e7   : > { %v2812_v30 = vadd.f32 %v2811_v62, %v2547_v23  ;;  %v2828_v20 = vadd.f32 %v2827_v35, %v2562_v24  ;;  %v2267_v4 = vadd.f32 %v4312_v8, %v1904_v57  ;;  %v2577_v3 = vmul.f32 %v1904_v57, %v1904_v57  ;;  %v1906_v49 = vpop.f32.mrf.mxu0  ;;  %v2019_v51 = vpop.f32.mrf.mxu1 }
 0x1e8   : > { %2237 = vadd.xlane.f32.xlu0 %v2236_v54  ;;  %v2252_v26 = vadd.f32 %v2251_v50, %v2011_v48  ;;  %v2876_v12 = vadd.f32 %v2875_v29, %v4342_v44  ;;  %v2623_v11 = vmul.f32 %v4550_v16, %v4550_v16  ;;  %v2315_v25 = vadd.f32 %v2314_v7, %v4549_v0  ;;  %v4551_v7 = vld [vmem:[#allocation15_spill] sm:$0xff] }
 0x1e9   : > { %v2563_v14 = vmul.f32 %v2011_v48, %v2011_v48  ;;  %v2844_v34 = vadd.f32 %v4336_v38, %v2577_v3  ;;  %v2268_v5 = vadd.f32 %v2267_v4, %v1906_v49  ;;  %v2578_v58 = vmul.f32 %v1906_v49, %v1906_v49  ;;  %2797 = vadd.xlane.f32.xlu1 %v2796_v9  ;;  %v1908_v27 = vpop.f32.mrf.mxu0  ;;  %v2021_v39 = vpop.f32.mrf.mxu1 }
 0x1ea   : > { %v2813_v8 = vadd.f32 %v2812_v30, %v2548_v2  ;;  %v2892_v46 = vadd.f32 %v2891_v61, %v2622_v55  ;;  %v2579_v10 = vmul.f32 %v2017_v36, %v2017_v36  ;;  %v2253_v59 = vadd.f32 %v2252_v26, %v2013_v63 }
 0x1eb   : > { %v2829_v18 = vadd.f32 %v2828_v20, %v2563_v14  ;;  %v2845_v44 = vadd.f32 %v2844_v34, %v2578_v58  ;;  %v2284_v43 = vadd.f32 %v4346_v15, %v1908_v27  ;;  %v2593_v31 = vmul.f32 %v1908_v27, %v1908_v27  ;;  %v1910_v28 = vpop.f32.mrf.mxu0  ;;  %v2023_v52 = vpop.f32.mrf.mxu1 }
 0x1ec   : > { %2814 = vadd.xlane.f32.xlu0 %v2813_v8  ;;  %v2269_v37 = vadd.f32 %v2268_v5, %v2017_v36  ;;  %v2300_v38 = vadd.f32 %v4360_v32, %v4143_v41  ;;  %v2316_v40 = vadd.f32 %v2315_v25, %v4550_v16  ;;  %v2564_v1 = vmul.f32 %v2013_v63, %v2013_v63 }
 0x1ed   : > { %v2580_v21 = vmul.f32 %v2019_v51, %v2019_v51  ;;  %v2861_v60 = vadd.f32 %v4357_v22, %v2593_v31  ;;  %v2285_v23 = vadd.f32 %v2284_v43, %v1910_v28  ;;  %v2594_v17 = vmul.f32 %v1910_v28, %v1910_v28  ;;  %2254 = vadd.xlane.f32.xlu1 %v2253_v59  ;;  %v1914_v42 = vpop.f32.mrf.mxu0  ;;  %v2027_v29 = vpop.f32.mrf.mxu1  ;;  %v2357_v31 = vld [vmem:[%s4239_s25] sm:$0xff] }
 0x1ee   : > { %v2270_v13 = vadd.f32 %v2269_v37, %v2019_v51  ;;  %v2877_v15 = vadd.f32 %v2876_v12, %v4364_v6  ;;  %v2893_v62 = vadd.f32 %v2892_v46, %v2623_v11  ;;  %v2830_v56 = vadd.f32 %v2829_v18, %v2564_v1  ;;  %v2036_v18 = vld [vmem:[%s3871_s22] sm:$0xff]  ;;  %v2358_v37 = vld [vmem:[%s4239_s25 + $0x8] sm:$0xff] }
 0x1ef   : > { %v2846_v48 = vadd.f32 %v2845_v44, %v2579_v10  ;;  %v2862_v33 = vadd.f32 %v2861_v60, %v2594_v17  ;;  %v2301_v41 = vadd.f32 %v2300_v38, %v1914_v42  ;;  %v2609_v32 = vmul.f32 %v1914_v42, %v1914_v42  ;;  %v1916_v45 = vpop.f32.mrf.mxu0  ;;  %v2029_v53 = vpop.f32.mrf.mxu1  ;;  %v2037_v1 = vld [vmem:[%s3871_s22 + $0x8] sm:$0xff]  ;;  %v2038_v60 = vld [vmem:[%s3871_s22 + $0x10] sm:$0xff] }
 0x1f0   : > { %2271 = vadd.xlane.f32.xlu0 %v2270_v13  ;;  %v2286_v19 = vadd.f32 %v2285_v23, %v2021_v39  ;;  %v2317_v47 = vadd.f32 %v2316_v40, %v4551_v7  ;;  %v2624_v22 = vmul.f32 %v4551_v7, %v4551_v7  ;;  %v2595_v2 = vmul.f32 %v2021_v39, %v2021_v39  ;;  %v2361_v7 = vld [vmem:[%s4239_s25 + $0x20] sm:$0xff] }
 0x1f1   : > { %v2878_v35 = vadd.f32 %v2877_v15, %v2609_v32  ;;  %v2302_v50 = vadd.f32 %v2301_v41, %v1916_v45  ;;  %v2610_v6 = vmul.f32 %v1916_v45, %v1916_v45  ;;  %2831 = vadd.xlane.f32.xlu1 %v2830_v56  ;;  %v2847_v24 = vadd.f32 %v2846_v48, %v2580_v21  ;;  %v1918_v61 = vpop.f32.mrf.mxu0  ;;  %v2031_v25 = vpop.f32.mrf.mxu1  ;;  %v2040_v48 = vld [vmem:[%s3871_s22 + $0x20] sm:$0xff]  ;;  %v2360_v32 = vld [vmem:[%s4239_s25 + $0x18] sm:$0xff] }
 0x1f2   : > { %v2894_v63 = vadd.f32 %v2893_v62, %v2624_v22  ;;  %v2611_v54 = vmul.f32 %v2027_v29, %v2027_v29  ;;  %v2287_v0 = vadd.f32 %v2286_v19, %v2023_v52  ;;  %v2863_v55 = vadd.f32 %v2862_v33, %v2595_v2  ;;  %v2039_v62 = vld [vmem:[%s3871_s22 + $0x18] sm:$0xff]  ;;  %v2041_v2 = vld [vmem:[%s3871_s22 + $0x28] sm:$0xff] }
 0x1f3   : > { %v2879_v57 = vadd.f32 %v2878_v35, %v2610_v6  ;;  %v2318_v9 = vadd.f32 %v2317_v47, %v1918_v61  ;;  %v2625_v30 = vmul.f32 %v1918_v61, %v1918_v61  ;;  %v2303_v20 = vadd.f32 %v2302_v50, %v2027_v29  ;;  %v1920_v36 = vpop.f32.mrf.mxu0  ;;  %v2033_v8 = vpop.f32.mrf.mxu1  ;;  %v2042_v50 = vld [vmem:[%s3871_s22 + $0x30] sm:$0xff] }
 0x1f4   : > { %2848 = vadd.xlane.f32.xlu0 %v2847_v24  ;;  %v2596_v4 = vmul.f32 %v2023_v52, %v2023_v52  ;;  %v2612_v3 = vmul.f32 %v2029_v53, %v2029_v53  ;;  %v2626_v16 = vmul.f32 %v1920_v36, %v1920_v36  ;;  %v2627_v58 = vmul.f32 %v2031_v25, %v2031_v25  ;;  %v2359_v52 = vld [vmem:[%s4239_s25 + $0x10] sm:$0xff] }
 0x1f5   : > { %v2895_v26 = vadd.f32 %v2894_v63, %v2625_v30  ;;  %v2319_v12 = vadd.f32 %v2318_v9, %v1920_v36  ;;  %2288 = vadd.xlane.f32.xlu1 %v2287_v0  ;;  %v2304_v11 = vadd.f32 %v2303_v20, %v2029_v53  ;;  %v2880_v14 = vadd.f32 %v2879_v57, %v2611_v54  ;;  %v2362_v63 = vld [vmem:[%s4239_s25 + $0x28] sm:$0xff]  ;;  %v2363_v61 = vld [vmem:[%s4239_s25 + $0x30] sm:$0xff]  ;;  %v2043_v57 = vld [vmem:[%s3871_s22 + $0x38] sm:$0xff] }
 0x1f6   : > { %v2864_v5 = vadd.f32 %v2863_v55, %v2596_v4  ;;  %v2628_v27 = vmul.f32 %v2033_v8, %v2033_v8  ;;  %v2044_v20 = vld [vmem:[%s3871_s22 + $0x40] sm:$0xff]  ;;  %v2364_v36 = vld [vmem:[%s4239_s25 + $0x38] sm:$0xff] }
 0x1f7   : > { %v2896_v49 = vadd.f32 %v2895_v26, %v2626_v16  ;;  %v2320_v34 = vadd.f32 %v2319_v12, %v2031_v25  ;;  %v2881_v51 = vadd.f32 %v2880_v14, %v2612_v3  ;;  %v2365_v16 = vld [vmem:[%s4239_s25 + $0x40] sm:$0xff]  ;;  %v2045_v14 = vld [vmem:[%s3871_s22 + $0x48] sm:$0xff] }
 0x1f8   : > { %2305 = vadd.xlane.f32.xlu0 %v2304_v11 }
 0x1f9   : > { %2865 = vadd.xlane.f32.xlu1 %v2864_v5  ;;  %v2321_v46 = vadd.f32 %v2320_v34, %v2033_v8  ;;  %v2897_v10 = vadd.f32 %v2896_v49, %v2627_v58  ;;  %v2046_v5 = vld [vmem:[%s3871_s22 + $0x50] sm:$0xff]  ;;  %v2366_v8 = vld [vmem:[%s4239_s25 + $0x48] sm:$0xff] }
 0x1fb   : > { %v2898_v59 = vadd.f32 %v2897_v10, %v2628_v27  ;;  %v2367_v27 = vld [vmem:[%s4239_s25 + $0x50] sm:$0xff] }
 0x1fc   : > { %2882 = vadd.xlane.f32.xlu0 %v2881_v51 }
 0x1fd   : > { %2322 = vadd.xlane.f32.xlu1 %v2321_v46 }
 0x201   : > { %2899 = vadd.xlane.f32.xlu1 %v2898_v59 }
 0x247   : > { %v2068_v44 = vpop.xlane.xlu0 %2067 }
 0x248   : > { %v2324_v43 = vadd.f32 %v2068_v44, %v2036_v18  ;;  %v2047_v44 = vld [vmem:[%s3871_s22 + $0x58] sm:$0xff] }
 0x24a   : > { %2341 = vst.msk [vmem:[%s3871_s22] sm:$0xff] %vm267_vm0, %v2324_v43 }
 0x24b   : > { %v2645_v39 = vpop.xlane.xlu0 %2644 }
 0x24c   : > { %v2901_v38 = vadd.f32 %v2645_v39, %v2357_v31  ;;  %v2048_v39 = vld [vmem:[%s3871_s22 + $0x60] sm:$0xff] }
 0x24d   : > { %v2662_v40 = vpop.xlane.xlu1 %2661 }
 0x24e   : > { %2917 = vst.msk [vmem:[%s4239_s25] sm:$0xff] %vm267_vm0, %v2901_v38  ;;  %v2902_v21 = vadd.f32 %v2662_v40, %v2358_v37  ;;  %v2368_v40 = vld [vmem:[%s4239_s25 + $0x58] sm:$0xff] }
 0x24f   : > { %v2085_v28 = vpop.xlane.xlu0 %2084 }
 0x250   : > { %2918 = vst.msk [vmem:[%s4239_s25 + $0x8] sm:$0xff] %vm267_vm0, %v2902_v21  ;;  %v2325_v23 = vadd.f32 %v2085_v28, %v2037_v1  ;;  %v2369_v28 = vld [vmem:[%s4239_s25 + $0x60] sm:$0xff] }
 0x251   : > { %v2102_v17 = vpop.xlane.xlu1 %2101 }
 0x252   : > { %2342 = vst.msk [vmem:[%s3871_s22 + $0x8] sm:$0xff] %vm267_vm0, %v2325_v23  ;;  %v2326_v13 = vadd.f32 %v2102_v17, %v2038_v60  ;;  %v2049_v17 = vld [vmem:[%s3871_s22 + $0x68] sm:$0xff] }
 0x254   : > { %v2679_v15 = vpop.xlane.xlu0 %2678  ;;  %2343 = vst.msk [vmem:[%s3871_s22 + $0x10] sm:$0xff] %vm267_vm0, %v2326_v13 }
 0x255   : > { %v2903_v42 = vadd.f32 %v2679_v15, %v2359_v52  ;;  %v2119_v56 = vpop.xlane.xlu1 %2118  ;;  %v2050_v15 = vld [vmem:[%s3871_s22 + $0x70] sm:$0xff] }
 0x256   : > { %v2327_v33 = vadd.f32 %v2119_v56, %v2039_v62  ;;  %v2370_v56 = vld [vmem:[%s4239_s25 + $0x68] sm:$0xff] }
 0x257   : > { %2919 = vst.msk [vmem:[%s4239_s25 + $0x10] sm:$0xff] %vm267_vm0, %v2903_v42 }
 0x258   : > { %2344 = vst.msk [vmem:[%s3871_s22 + $0x18] sm:$0xff] %vm267_vm0, %v2327_v33 }
 0x259   : > { %v2136_v41 = vpop.xlane.xlu0 %2135 }
 0x25a   : > { %v2328_v29 = vadd.f32 %v2136_v41, %v2040_v48  ;;  %v2696_v19 = vpop.xlane.xlu1 %2695  ;;  %v2371_v41 = vld [vmem:[%s4239_s25 + $0x70] sm:$0xff] }
 0x25b   : > { %v2904_v47 = vadd.f32 %v2696_v19, %v2360_v32  ;;  %v2051_v19 = vld [vmem:[%s3871_s22 + $0x78] sm:$0xff] }
 0x25c   : > { %2345 = vst.msk [vmem:[%s3871_s22 + $0x20] sm:$0xff] %vm267_vm0, %v2328_v29 }
 0x25d   : > { %v2713_v22 = vpop.xlane.xlu0 %2712  ;;  %2920 = vst.msk [vmem:[%s4239_s25 + $0x18] sm:$0xff] %vm267_vm0, %v2904_v47 }
 0x25e   : > { %v2905_v45 = vadd.f32 %v2713_v22, %v2361_v7  ;;  %v2153_v35 = vpop.xlane.xlu1 %2152 }
 0x25f   : > { %v2329_v6 = vadd.f32 %v2153_v35, %v2041_v2  ;;  %v2372_v2 = vld [vmem:[%s4239_s25 + $0x78] sm:$0xff] }
 0x260   : > { %2921 = vst.msk [vmem:[%s4239_s25 + $0x20] sm:$0xff] %vm267_vm0, %v2905_v45 }
 0x261   : > { %v2170_v24 = vpop.xlane.xlu0 %2169  ;;  %2346 = vst.msk [vmem:[%s3871_s22 + $0x28] sm:$0xff] %vm267_vm0, %v2329_v6 }
 0x262   : > { %v2330_v54 = vadd.f32 %v2170_v24, %v2042_v50  ;;  %v2730_v53 = vpop.xlane.xlu1 %2729 }
 0x263   : > { %v2906_v0 = vadd.f32 %v2730_v53, %v2362_v63 }
 0x264   : > { %2347 = vst.msk [vmem:[%s3871_s22 + $0x30] sm:$0xff] %vm267_vm0, %v2330_v54 }
 0x265   : > { %v2747_v55 = vpop.xlane.xlu0 %2746  ;;  %2922 = vst.msk [vmem:[%s4239_s25 + $0x28] sm:$0xff] %vm267_vm0, %v2906_v0 }
 0x266   : > { %v2907_v9 = vadd.f32 %v2747_v55, %v2363_v61  ;;  %v2187_v30 = vpop.xlane.xlu1 %2186 }
 0x267   : > { %v2331_v4 = vadd.f32 %v2187_v30, %v2043_v57 }
 0x268   : > { %2923 = vst.msk [vmem:[%s4239_s25 + $0x30] sm:$0xff] %vm267_vm0, %v2907_v9 }
 0x269   : > { %v2204_v3 = vpop.xlane.xlu0 %2203  ;;  %2348 = vst.msk [vmem:[%s3871_s22 + $0x38] sm:$0xff] %vm267_vm0, %v2331_v4 }
 0x26a   : > { %v2332_v26 = vadd.f32 %v2204_v3, %v2044_v20  ;;  %v2764_v12 = vpop.xlane.xlu1 %2763 }
 0x26b   : > { %v2908_v11 = vadd.f32 %v2764_v12, %v2364_v36 }
 0x26c   : > { %2349 = vst.msk [vmem:[%s3871_s22 + $0x40] sm:$0xff] %vm267_vm0, %v2332_v26 }
 0x26d   : > { %v2781_v25 = vpop.xlane.xlu0 %2780  ;;  %2924 = vst.msk [vmem:[%s4239_s25 + $0x38] sm:$0xff] %vm267_vm0, %v2908_v11 }
 0x26e   : > { %v2909_v49 = vadd.f32 %v2781_v25, %v2365_v16  ;;  %v2221_v34 = vpop.xlane.xlu1 %2220 }
 0x26f   : > { %v2333_v58 = vadd.f32 %v2221_v34, %v2045_v14 }
 0x270   : > { %2925 = vst.msk [vmem:[%s4239_s25 + $0x40] sm:$0xff] %vm267_vm0, %v2909_v49 }
 0x271   : > { %v2238_v51 = vpop.xlane.xlu0 %2237  ;;  %2350 = vst.msk [vmem:[%s3871_s22 + $0x48] sm:$0xff] %vm267_vm0, %v2333_v58 }
 0x272   : > { %v2334_v46 = vadd.f32 %v2238_v51, %v2046_v5  ;;  %v2798_v10 = vpop.xlane.xlu1 %2797 }
 0x273   : > { %v2910_v59 = vadd.f32 %v2798_v10, %v2366_v8 }
 0x274   : > { %2351 = vst.msk [vmem:[%s3871_s22 + $0x50] sm:$0xff] %vm267_vm0, %v2334_v46 }
 0x275   : > { %v2815_v18 = vpop.xlane.xlu0 %2814  ;;  %2926 = vst.msk [vmem:[%s4239_s25 + $0x48] sm:$0xff] %vm267_vm0, %v2910_v59 }
 0x276   : > { %v2911_v43 = vadd.f32 %v2815_v18, %v2367_v27  ;;  %v2255_v31 = vpop.xlane.xlu1 %2254 }
 0x277   : > { %v2335_v37 = vadd.f32 %v2255_v31, %v2047_v44 }
 0x278   : > { %2927 = vst.msk [vmem:[%s4239_s25 + $0x50] sm:$0xff] %vm267_vm0, %v2911_v43 }
 0x279   : > { %v2272_v38 = vpop.xlane.xlu0 %2271  ;;  %2352 = vst.msk [vmem:[%s3871_s22 + $0x58] sm:$0xff] %vm267_vm0, %v2335_v37 }
 0x27a   : > { %v2336_v1 = vadd.f32 %v2272_v38, %v2048_v39  ;;  %v2832_v21 = vpop.xlane.xlu1 %2831 }
 0x27b   : > { %v2912_v60 = vadd.f32 %v2832_v21, %v2368_v40 }
 0x27c   : > { %2353 = vst.msk [vmem:[%s3871_s22 + $0x60] sm:$0xff] %vm267_vm0, %v2336_v1 }
 0x27d   : > { %v2849_v23 = vpop.xlane.xlu0 %2848  ;;  %2928 = vst.msk [vmem:[%s4239_s25 + $0x58] sm:$0xff] %vm267_vm0, %v2912_v60 }
 0x27e   : > { %v2913_v52 = vadd.f32 %v2849_v23, %v2369_v28  ;;  %v2289_v13 = vpop.xlane.xlu1 %2288 }
 0x27f   : > { %v2337_v62 = vadd.f32 %v2289_v13, %v2049_v17 }
 0x280   : > { %2929 = vst.msk [vmem:[%s4239_s25 + $0x60] sm:$0xff] %vm267_vm0, %v2913_v52 }
 0x281   : > { %v2306_v42 = vpop.xlane.xlu0 %2305  ;;  %2354 = vst.msk [vmem:[%s3871_s22 + $0x68] sm:$0xff] %vm267_vm0, %v2337_v62 }
 0x282   : > { %v2338_v48 = vadd.f32 %v2306_v42, %v2050_v15  ;;  %v2866_v33 = vpop.xlane.xlu1 %2865 }
 0x283   : > { %v2914_v32 = vadd.f32 %v2866_v33, %v2370_v56 }
 0x284   : > { %2355 = vst.msk [vmem:[%s3871_s22 + $0x70] sm:$0xff] %vm267_vm0, %v2338_v48 }
 0x285   : > { %v2883_v29 = vpop.xlane.xlu0 %2882  ;;  %2930 = vst.msk [vmem:[%s4239_s25 + $0x68] sm:$0xff] %vm267_vm0, %v2914_v32 }
 0x286   : > { %v2915_v7 = vadd.f32 %v2883_v29, %v2371_v41  ;;  %v2323_v47 = vpop.xlane.xlu1 %2322 }
 0x287   : > { %v2339_v22 = vadd.f32 %v2323_v47, %v2051_v19 }
 0x288   : > { %2931 = vst.msk [vmem:[%s4239_s25 + $0x70] sm:$0xff] %vm267_vm0, %v2915_v7 }
 0x289   : > { %2356 = vst.msk [vmem:[%s3871_s22 + $0x78] sm:$0xff] %vm267_vm0, %v2339_v22 }
 0x28a   : > { %v2900_v45 = vpop.xlane.xlu1 %2899 }
 0x28b   : > { %v2916_v35 = vadd.f32 %v2900_v45, %v2372_v2 }
 0x28d   : > { %2932 = vst.msk [vmem:[%s4239_s25 + $0x78] sm:$0xff] %vm267_vm0, %v2916_v35 }
 0x28e PF: > { %s15_s17 = sadd.s32 1, %s3313_s17   ;;  %s4552_s15 = smov %s3309_s16 }
 0x28f   : > { %p12_p5 = scmp.ge.s32.totalorder %s15_s17, 4   ;;  %s4553_s16 = smov %s4555_s18 }
 0x291   :  { %14 = sbr.rel (!%p12_p5) target bundleno = 2 (0x2), region = 86 }

</bundles_post_ra>
